<compile_context>
chip_gen: v6e
topology: v6e:2x2x1
jax: 0.10.0
libtpu: 0.0.40
codegen_flags: <defaults>
</compile_context>

<pallas_src>
import functools

import jax
import jax.numpy as jnp
import numpy as np
from jax.experimental import pallas as pl
from jax.experimental.pallas import tpu as pltpu


def _cdiv(a, b):
    return -(-a // b)


def _round_up(a, b):
    return _cdiv(a, b) * b


# ----------------------------------------------------------------------------
# Kernels
# ----------------------------------------------------------------------------
def _sine_kernel(x_ref, wt_ref, b_ref, o_ref):
    # x_ref : (tm, d_in)     input row tile
    # wt_ref: (d_in, d_out)  full omega-folded W^T (resident, single-buffered)
    # b_ref : (1, d_out)     omega-folded bias (f32)
    # o_ref : (tm, d_out)    output tile
    x = x_ref[...].astype(wt_ref.dtype)               # bf16 MXU path if wt is bf16
    z = jnp.dot(x, wt_ref[...], preferred_element_type=jnp.float32)
    o_ref[...] = jnp.sin(z + b_ref[...]).astype(o_ref.dtype)   # sin stays f32


def _sine_kernel_ktiled(x_ref, wt_ref, b_ref, o_ref, acc_ref):
    # Reduction over the K (d_in) grid axis; accumulator in f32 VMEM scratch.
    k = pl.program_id(1)

    @pl.when(k == 0)
    def _():
        acc_ref[...] = jnp.zeros_like(acc_ref)

    x = x_ref[...].astype(wt_ref.dtype)
    acc_ref[...] += jnp.dot(x, wt_ref[...], preferred_element_type=jnp.float32)

    @pl.when(k == pl.num_programs(1) - 1)
    def _():
        o_ref[...] = jnp.sin(acc_ref[...] + b_ref[...]).astype(o_ref.dtype)


# ----------------------------------------------------------------------------
# Parameter prep (one-time transform, not a per-call wrapper op)
# ----------------------------------------------------------------------------
def prepare_sine_layer_params(weight, bias, *, omega_0=30.0,
                              param_dtype=jnp.float32):
    """Fold omega_0 and the transpose into the stored parameters.

    Returns:
      wt: [d_in, d_out]  = (omega_0 * W).T, optionally cast to bf16 for the MXU
      b2: [1, d_out]     = omega_0 * b, kept in f32 (added after f32 accumulate)
    """
    w = jnp.asarray(weight, jnp.float32)
    b = jnp.asarray(bias, jnp.float32)
    wt = (omega_0 * w).T.astype(param_dtype)
    b2 = (omega_0 * b).reshape(1, -1).astype(jnp.float32)
    return wt, b2


# ----------------------------------------------------------------------------
# Wrapper
# ----------------------------------------------------------------------------
def sine_layer(x, wt, b2, *, tm=512, tk=None, vmem_cap_bytes=64 * 1024 * 1024):
    """Pallas SineLayer forward: sin(x @ wt + b2) with omega already folded in.

    Args:
      x:  [N, d_in]  float32 (or bf16)
      wt: [d_in, d_out]  omega-folded, pre-transposed weight (f32 or bf16)
      b2: [1, d_out] omega-folded bias, float32
    Returns:
      [N, d_out] in x.dtype
    """
    n, d_in = x.shape
    d_in_w, d_out = wt.shape
    assert d_in == d_in_w, (d_in, d_in_w)
    assert b2.shape == (1, d_out), b2.shape
    out_dtype = x.dtype

    # --- row tiling ---------------------------------------------------------
    tm = max(8, min(int(tm), _round_up(n, 8)))
    # Expose at least two row tiles when possible (feeds both TCs on v7x).
    if _round_up(n, tm) // tm < 2 and tm > 8:
        tm = max(8, _round_up(_cdiv(tm, 2), 8))
    n_p = _round_up(n, tm)

    # --- K tiling decision (weight-resident unless it gets big) --------------
    d_out_p = _round_up(d_out, 128)                     # lane-dense stores
    w_sz = np.dtype(wt.dtype).itemsize
    resident_w_bytes = d_in * d_out_p * w_sz
    if tk is None:
        tk = d_in if resident_w_bytes <= (16 << 20) else 512
    ktiled = tk < d_in
    if ktiled:
        tk = _round_up(min(int(tk), d_in), 128)         # lane-aligned K tiles
        d_in_p = _round_up(d_in, tk)
        ktiled = tk < d_in_p
    if not ktiled:
        tk = d_in
        d_in_p = d_in

    # --- padding (plain JAX glue; pad rows/cols are zero => no contribution) -
    if (n_p, d_in_p) != (n, d_in):
        x = jnp.pad(x, ((0, n_p - n), (0, d_in_p - d_in)))
    if (d_in_p, d_out_p) != (d_in, d_out):
        wt = jnp.pad(wt, ((0, d_in_p - d_in), (0, d_out_p - d_out)))
        b2 = jnp.pad(b2, ((0, 0), (0, d_out_p - d_out)))

    x_sz = np.dtype(x.dtype).itemsize
    o_sz = np.dtype(out_dtype).itemsize

    if ktiled:
        grid = (n_p // tm, d_in_p // tk)
        in_specs = [
            pl.BlockSpec((tm, tk), lambda i, k: (i, k)),
            pl.BlockSpec((tk, d_out_p), lambda i, k: (k, 0)),
            pl.BlockSpec((1, d_out_p), lambda i, k: (0, 0),
                         pipeline_mode=pl.Buffered(1)),
        ]
        out_specs = pl.BlockSpec((tm, d_out_p), lambda i, k: (i, 0))
        scratch_shapes = [pltpu.VMEM((tm, d_out_p), jnp.float32)]
        kernel = _sine_kernel_ktiled
        dim_sem = ("parallel", "arbitrary")
        need = (2 * tm * tk * x_sz            # x tiles, double-buffered
                + 2 * tk * d_out_p * w_sz     # weight tiles, double-buffered
                + d_out_p * 4                 # bias, single-buffered
                + 2 * tm * d_out_p * o_sz     # out tiles, double-buffered
                + tm * d_out_p * 4)           # accumulator scratch
    else:
        grid = (n_p // tm,)
        in_specs = [
            pl.BlockSpec((tm, d_in_p), lambda i: (i, 0)),
            pl.BlockSpec((d_in_p, d_out_p), lambda i: (0, 0),
                         pipeline_mode=pl.Buffered(1)),   # constant -> 1 buffer
            pl.BlockSpec((1, d_out_p), lambda i: (0, 0),
                         pipeline_mode=pl.Buffered(1)),
        ]
        out_specs = pl.BlockSpec((tm, d_out_p), lambda i: (i, 0))
        scratch_shapes = []
        kernel = _sine_kernel
        dim_sem = ("parallel",)
        need = (2 * tm * d_in_p * x_sz
                + d_in_p * d_out_p * w_sz
                + d_out_p * 4
                + 2 * tm * d_out_p * o_sz)

    vmem_limit = int(min(vmem_cap_bytes, max(2 * need + (2 << 20), 8 << 20)))

    out = pl.pallas_call(
        kernel,
        out_shape=jax.ShapeDtypeStruct((n_p, d_out_p), out_dtype),
        grid_spec=pltpu.PrefetchScalarGridSpec(
            num_scalar_prefetch=0,
            grid=grid,
            in_specs=in_specs,
            out_specs=out_specs,
            scratch_shapes=scratch_shapes,
        ),
        compiler_params=pltpu.CompilerParams(
            dimension_semantics=dim_sem,
            vmem_limit_bytes=vmem_limit,
        ),
    )(x, wt, b2)

    if (n_p, d_out_p) != (n, d_out):
        out = out[:n, :d_out]
    return out


# ----------------------------------------------------------------------------
# Deterministic re-implementation of SineLayer.init_weights (JAX)
# ----------------------------------------------------------------------------
def init_sine_layer_params(key, input_units, output_units, *,
                           is_first=False, omega_0=30.0,
                           weight_init_type="uniform"):
    kw, kb = jax.random.split(key)
    if is_first:
        bound = 1.0 / input_units
    else:
        bound = np.sqrt(6.0 / input_units) / omega_0

    if weight_init_type == "uniform":
        weight = jax.random.uniform(
            kw, (output_units, input_units), jnp.float32,
            minval=-bound, maxval=bound)
    elif weight_init_type == "normal":
        # torch.nn.init.normal_(mean=-bound, std=bound)
        weight = -bound + bound * jax.random.normal(
            kw, (output_units, input_units), jnp.float32)
    else:
        raise Exception(f"{weight_init_type} is not valid")

    # nn.Linear default bias init: U(-1/sqrt(fan_in), 1/sqrt(fan_in))
    bbound = 1.0 / np.sqrt(input_units)
    bias = jax.random.uniform(
        kb, (output_units,), jnp.float32, minval=-bbound, maxval=bbound)
    return weight, bias


if __name__ == "__main__":
    key = jax.random.PRNGKey(0)
    k_x1, k_p1, k_x3, k_p3 = jax.random.split(key, 4)

    OMEGA_0 = 30.0
    HIGH = jax.lax.Precision.HIGHEST

    # ---- Check 1: first SIREN layer, f32 weights, full-K resident path ------
    N, D_IN, D_OUT = 256, 64, 128
    x = jax.random.normal(k_x1, (N, D_IN), jnp.float32)
    weight, bias = init_sine_layer_params(
        k_p1, D_IN, D_OUT, is_first=True, omega_0=OMEGA_0)
    ref = jnp.sin(OMEGA_0 * (jnp.dot(x, weight.T, precision=HIGH) + bias))

    wt32, b2 = prepare_sine_layer_params(weight, bias, omega_0=OMEGA_0)
    out = jax.block_until_ready(sine_layer(x, wt32, b2))
    np.testing.assert_allclose(np.asarray(out), np.asarray(ref),
                               rtol=2e-5, atol=2e-5)

    # ---- Check 2: same layer, bf16 MXU operands (f32 accumulate, f32 sin) ---
    wt16, b2f = prepare_sine_layer_params(
        weight, bias, omega_0=OMEGA_0, param_dtype=jnp.bfloat16)
    out16 = jax.block_until_ready(sine_layer(x, wt16, b2f))
    np.testing.assert_allclose(np.asarray(out16), np.asarray(ref),
                               rtol=0.0, atol=1e-1)

    # ---- Check 3: K-tiled path + padded N + lane-padded small d_out ---------
    N3, D_IN3, D_OUT3 = 250, 256, 3
    x3 = jax.random.normal(k_x3, (N3, D_IN3), jnp.float32)
    w3, b3 = init_sine_layer_params(
        k_p3, D_IN3, D_OUT3, is_first=False, omega_0=OMEGA_0)
    ref3 = jnp.sin(OMEGA_0 * (jnp.dot(x3, w3.T, precision=HIGH) + b3))

    wt3, b3f = prepare_sine_layer_params(w3, b3, omega_0=OMEGA_0)
    out3 = jax.block_until_ready(sine_layer(x3, wt3, b3f, tk=128))
    np.testing.assert_allclose(np.asarray(out3), np.asarray(ref3),
                               rtol=2e-5, atol=2e-5)

    print("KERNEL_OK")
</pallas_src>

<mosaic_0001>
module attributes {stable_mosaic.version = 11 : i64} {
  func.func @_sine_kernel(%arg0: i32, %arg1: memref<128x64xf32, #tpu.memory_space<vmem>>, %arg2: memref<64x128xf32, #tpu.memory_space<vmem>>, %arg3: memref<1x128xf32, #tpu.memory_space<vmem>>, %arg4: memref<128x128xf32, #tpu.memory_space<vmem>>) attributes {dimension_semantics = [#tpu.dimension_semantics<parallel>], iteration_bounds = array<i64: 2>, scalar_prefetch = 0 : i64, scratch_operands = 0 : i64, tpu.core_type = #tpu.core_type<tc>, window_params = [{transform_indices = @transform_0, window_bounds = array<i64: 128, 64>}, {pipeline_mode = #tpu.pipeline_mode<synchronous>, transform_indices = @transform_1, window_bounds = array<i64: 64, 128>}, {pipeline_mode = #tpu.pipeline_mode<synchronous>, transform_indices = @transform_2, window_bounds = array<i64: 1, 128>}, {transform_indices = @transform_3, window_bounds = array<i64: 128, 128>}]} {
    %c0 = arith.constant 0 : index
    %c0_0 = arith.constant 0 : index
    %0 = vector.load %arg1[%c0, %c0_0] : memref<128x64xf32, #tpu.memory_space<vmem>>, vector<128x64xf32>
    %c0_1 = arith.constant 0 : index
    %c0_2 = arith.constant 0 : index
    %1 = vector.load %arg2[%c0_1, %c0_2] : memref<64x128xf32, #tpu.memory_space<vmem>>, vector<64x128xf32>
    %cst = arith.constant dense<0.000000e+00> : vector<128x128xf32>
    %2 = tpu.matmul %0, %1, %cst {dimension_numbers = #tpu.dot_dimension_numbers<[1], [0], [0], [1], [0, 0, 1, 1], [], []>} : vector<128x64xf32>, vector<64x128xf32>, vector<128x128xf32> -> vector<128x128xf32>
    %c0_3 = arith.constant 0 : index
    %c0_4 = arith.constant 0 : index
    %3 = vector.load %arg3[%c0_3, %c0_4] : memref<1x128xf32, #tpu.memory_space<vmem>>, vector<1x128xf32>
    %4 = vector.broadcast %3 : vector<1x128xf32> to vector<128x128xf32>
    %5 = arith.addf %2, %4 : vector<128x128xf32>
    %6 = math.sin %5 : vector<128x128xf32>
    %c0_5 = arith.constant 0 : index
    %c0_6 = arith.constant 0 : index
    %7 = vector.load %arg4[%c0_5, %c0_6] : memref<128x128xf32, #tpu.memory_space<vmem>>, vector<128x128xf32>
    tpu.vector_store %arg4[%c0_5, %c0_6], %6 {strides = array<i32>} : memref<128x128xf32, #tpu.memory_space<vmem>>, vector<128x128xf32>,
    return
  }
  func.func @transform_0(%arg0: i32) -> (i32, i32) {
    %c0_i32 = arith.constant 0 : i32
    %c0_i32_0 = arith.constant 0 : i32
    return %arg0, %c0_i32 : i32, i32
  }
  func.func @transform_1(%arg0: i32) -> (i32, i32) {
    %c0_i32 = arith.constant 0 : i32
    %c0_i32_0 = arith.constant 0 : i32
    %c0_i32_1 = arith.constant 0 : i32
    return %c0_i32, %c0_i32_0 : i32, i32
  }
  func.func @transform_2(%arg0: i32) -> (i32, i32) {
    %c0_i32 = arith.constant 0 : i32
    %c0_i32_0 = arith.constant 0 : i32
    %c0_i32_1 = arith.constant 0 : i32
    return %c0_i32, %c0_i32_0 : i32, i32
  }
  func.func @transform_3(%arg0: i32) -> (i32, i32) {
    %c0_i32 = arith.constant 0 : i32
    %c0_i32_0 = arith.constant 0 : i32
    return %arg0, %c0_i32 : i32, i32
  }
}

</mosaic_0001>

<bundles_post_ra>
// kernel: tpu_custom_call.1
= control target key start
LH: loop header
LB: loop body
LE: loop exit
PB: predicated region body
PF: predicated region fallthrough
CT: control target
= control target key end

     0   :  { %8 = vsyncpa [#allocation3], 0  ;;  %s3900_s0 = inlined_call_operand.vmem [shape: f32[256,64], index: 0, kind: input, shape index: {}]   ;;  %s3901_s1 = inlined_call_operand.vmem [shape: f32[64,128], index: 1, kind: input, shape index: {}]   ;;  %s3902_s2 = inlined_call_operand.vmem [shape: f32[1,128], index: 2, kind: input, shape index: {}]   ;;  %s3903_s3 = inlined_call_operand.hbm [shape: f32[256,128], index: 3, kind: output, shape index: {}]  }
   0x1   :  { %10 = vsyncpa [#allocation3 + $0x1], 0  ;;  %s2595_s12 = smov 0   ;;  %s2597_s13 = smov 0  }
   0x2   :  { %s2599_s14 = smov 0   ;;  %s2601_s15 = smov 0  }
   0x3 LB: > { %s2616_s16 = sadd.s32 4294967295, %s2564_s15   ;;  %s2153_s17 = sadd.s32 4294967294, %s2564_s15   ;;  %s2564_s15 = sphi %s2601_s15, %s3937_s15   ;;  %s2560_s14 = sphi %s2599_s14, %s3936_s14   ;;  %s2556_s13 = sphi %s2597_s13, %s3935_s13   ;;  %s2552_s12 = sphi %s2595_s12, %s3934_s12  }
   0x4   : > { %s2620_s18 = sadd.s32 1, %s2564_s15   ;;  %s91_s19 = sadd.s32 1, %s2560_s14 }
   0x5   : > { %s88_s20 = ssub.s32 %s2564_s15, %s2620_s18  ;;  %p101_p0 = scmp.ne.s32.totalorder %s2560_s14, %s2556_s13 }
   0x6   : > { %p89_p1 = scmp.eq.s32.totalorder %s88_s20, 0  ;;  %p102_p2 = scmp.eq.s32.totalorder %s2616_s16, 1 }
   0x7   : > { %p107_p3 = scmp.ne.s32.totalorder %s2556_s13, %s2552_s12  ;;  %p108_p4 = scmp.eq.s32.totalorder %s2153_s17, 1 }
   0x8   : > { %s2631_s21 = scalar_select %p89_p1, %s2560_s14, %s91_s19  }
   0x9   : > { %p2633_p5 = por %p102_p2, %p101_p0  ;;  %p2637_p6 = por %p108_p4, %p107_p3 }
   0xa   : > { %p2156_p7 = scmp.ge.s32.totalorder %s2564_s15, 1  ;;  %p141_p8 = scmp.lt.s32.totalorder %s2564_s15, 3 }
   0xc   : > { %p142_p9 = pnand %p2156_p7, %p141_p8 }
   0xd   : > { %s2158_s28 = sshll.u32 (!%p142_p9), %s2616_s16, 4  ;;  %s162_s29 = sand.u32 (!%p142_p9), 1, %s2556_s13  }
   0xe   : > { %145 = sbr.rel (%p142_p9) target bundleno = 680 (0x2a8), region = 32  ;;  %p166_p10 = scmp.lt.s32.totalorder (!%p142_p9), %s2158_s28, 31 }
   0xf   : > { %s2157_s30 = sshll.u32 (!%p142_p9), %s162_s29, 7  ;;  %s2246_s9 = sshll.u32 (!%p142_p9), %s2616_s16, 11 }
  0x10   : > { %s3014_s4 = scalar_lea.vmem (!%p142_p9), [#allocation2], %s2157_s30  ;;  %s3852_s19 = scalar_lea.hbm (!%p142_p9), %s3903_s3, %s2246_s9 }
  0x11   : > { %s3860_s16 = scalar_lea.sflag (!%p142_p9), [#allocation3], %s162_s29 }
  0x13   : > { %v195_v0 = vld [vmem:[%s3901_s1 + $0x38] sm:$0xff]  ;;  %v194_v1 = vld [vmem:[%s3901_s1 + $0x30] sm:$0xff]  ;;  %v193_v2 = vld [vmem:[%s3901_s1 + $0x28] sm:$0xff]  ;;  %s3939_s28 = smov (!%p166_p10, %s2158_s28), 31  ;;  %vm203_vm0 = vcmask 523264  }
  0x14   : > { %2271 = vmatprep.subr.mxu0 %v195_v0  ;;  %2311 = vmatprep.subr.mxu1 %v195_v0  ;;  %v192_v3 = vld [vmem:[%s3901_s1 + $0x20] sm:$0xff]  ;;  %v191_v4 = vld [vmem:[%s3901_s1 + $0x18] sm:$0xff]  ;;  %v190_v5 = vld [vmem:[%s3901_s1 + $0x10] sm:$0xff]  ;;  %s2159_s10 = sshll.u32 %s3939_s28, 3  ;;  %v2566_v60 = vmov 683565275  }
  0x15   : > { %2272 = vmatpush3.msra.mxu0 %v195_v0  ;;  %2319 = vmatpush3.msra.mxu1 %v195_v0  ;;  %v189_v6 = vld [vmem:[%s3901_s1 + $0x8] sm:$0xff]  ;;  %s2668_s24 = scalar_lea.vmem %s3900_s0, %s2159_s10  ;;  %v188_v7 = vld [vmem:[%s3901_s1] sm:$0xff]  ;;  %v2567_v0 = vmov 2475754826   ;;  %s2091_s10 = sshll.u32 %s3014_s4, 4  ;;  %s3854_s10 = int_to_ptr.vmem [resolvable:$true] %s2091_s10 }
  0x16   : > { %2273 = vmatprep.subr.mxu0 %v194_v1  ;;  %2312 = vmatprep.subr.mxu1 %v194_v1  ;;  %v172_v8 = vld [vmem:[%s2668_s24] sm:$0xff]  ;;  %v173_v10 = vld [vmem:[%s2668_s24 + $0x8] sm:$0xff]  ;;  %v174_v12 = vld [vmem:[%s2668_s24 + $0x10] sm:$0xff]  ;;  %s2504_s20 = scalar_lea.vmem %s3854_s10, 2048 }
  0x17   : > { %2274 = vmatpush3.msra.mxu0 %v194_v1  ;;  %2320 = vmatpush3.msra.mxu1 %v194_v1  ;;  %v180_v9 = vld [vmem:[%s2668_s24 + $0x40] sm:$0xff]  ;;  %v181_v11 = vld [vmem:[%s2668_s24 + $0x48] sm:$0xff]  ;;  %v182_v13 = vld [vmem:[%s2668_s24 + $0x50] sm:$0xff]  ;;  %p2505_p11 = scmp.ne.s32.totalorder %s3854_s10, %s2504_s20 }
  0x18   : > { %2275 = vmatprep.subr.mxu0 %v193_v2  ;;  %2313 = vmatprep.subr.mxu1 %v193_v2  ;;  %v175_v14 = vld [vmem:[%s2668_s24 + $0x18] sm:$0xff]  ;;  %v176_v16 = vld [vmem:[%s2668_s24 + $0x20] sm:$0xff]  ;;  %v177_v18 = vld [vmem:[%s2668_s24 + $0x28] sm:$0xff] }
  0x19   : > { %2276 = vmatpush3.msra.mxu0 %v193_v2  ;;  %2321 = vmatpush3.msra.mxu1 %v193_v2  ;;  %v183_v15 = vld [vmem:[%s2668_s24 + $0x58] sm:$0xff]  ;;  %v184_v17 = vld [vmem:[%s2668_s24 + $0x60] sm:$0xff]  ;;  %v185_v19 = vld [vmem:[%s2668_s24 + $0x68] sm:$0xff]  ;;  %v2568_v2 = vmov 2131351028   ;;  %p2506_p12 = pnand %p2505_p11, %p2633_p5 }
  0x1a   : > { %2277 = vmatprep.subr.mxu0 %v192_v3  ;;  %2314 = vmatprep.subr.mxu1 %v192_v3  ;;  %v178_v20 = vld [vmem:[%s2668_s24 + $0x30] sm:$0xff]  ;;  %v179_v22 = vld [vmem:[%s2668_s24 + $0x38] sm:$0xff]  ;;  %v2708_v24 = vld [vmem:[%s3902_s2] ss:$0 sm:$0xff] }
  0x1b   : > { %2278 = vmatpush3.msra.mxu0 %v192_v3  ;;  %2322 = vmatpush3.msra.mxu1 %v192_v3  ;;  %v186_v21 = vld [vmem:[%s2668_s24 + $0x70] sm:$0xff]  ;;  %v187_v23 = vld [vmem:[%s2668_s24 + $0x78] sm:$0xff]  ;;  %p2507_p13 = pneg %p2506_p12  ;;  %s2572_s24 = smov [#allocation2]  }
  0x1c   : > { %2279 = vmatprep.subr.mxu0 %v191_v4  ;;  %2315 = vmatprep.subr.mxu1 %v191_v4  ;;  %s2508_s25 = sshll.u32 %s2572_s24, 4  ;;  %s2509_s25 = int_to_ptr.vmem [resolvable:$false] %s2508_s25 }
  0x1d   : > { %2280 = vmatpush3.msra.mxu0 %v191_v4  ;;  %2323 = vmatpush3.msra.mxu1 %v191_v4  ;;  %v2569_v4 = vmov 2102212464   ;;  %s2510_s26 = scalar_lea.vmem %s2509_s25, 4096  ;;  %p2511_p0 = scmp.lt.s32.totalorder %s3854_s10, %s2509_s25 }
  0x1e   : > { %2281 = vmatprep.subr.mxu0 %v190_v5  ;;  %2316 = vmatprep.subr.mxu1 %v190_v5  ;;  %p2512_p1 = scmp.lt.s32.totalorder %s2510_s26, %s2504_s20 }
  0x1f   : > { %2282 = vmatpush3.msra.mxu0 %v190_v5  ;;  %2324 = vmatpush3.msra.mxu1 %v190_v5 }
  0x20   : > { %2283 = vmatprep.subr.mxu0 %v189_v6  ;;  %2317 = vmatprep.subr.mxu1 %v189_v6  ;;  %p2513_p2 = por %p2512_p1, %p2511_p0 }
  0x21   : > { %2284 = vmatpush3.msra.mxu0 %v189_v6  ;;  %2325 = vmatpush3.msra.mxu1 %v189_v6  ;;  %v2570_v6 = vmov 920167782  }
  0x22   : > { %2285 = vmatprep.subr.mxu0 %v188_v7  ;;  %2318 = vmatprep.subr.mxu1 %v188_v7  ;;  %p2514_p3 = pnand %p2513_p2, %p2507_p13 }
  0x23   : > { %2286 = vmatpush3.msra.mxu0 %v188_v7  ;;  %2326 = vmatpush3.msra.mxu1 %v188_v7 }
  0x24   : > { %2287 = vmatprep.mubr.msk.f32.mxu0 %vm203_vm0, %v172_v8  ;;  %2299 = vmatprep.mubr.msk.f32.mxu1 %vm203_vm0, %v180_v9 }
  0x25   : > { %2288 = vmatmul.mubr.msk.f32.vlgmr.msra.gmra.mxu0 %vm203_vm0, %v173_v10  ;;  %2300 = vmatmul.mubr.msk.f32.vlgmr.msra.gmra.mxu1 %vm203_vm0, %v181_v11 }
  0x26   : > { %2290 = vmatprep.mubr.msk.f32.mxu0 %vm203_vm0, %v174_v12  ;;  %2302 = vmatprep.mubr.msk.f32.mxu1 %vm203_vm0, %v182_v13  ;;  %v2571_v13 = vmov 1326507024  }
  0x29   : > { %2291 = vmatmul.mubr.msk.f32.gmra.mxu0 %vm203_vm0, %v175_v14  ;;  %2303 = vmatmul.mubr.msk.f32.gmra.mxu1 %vm203_vm0, %v183_v15 }
  0x2a   : > { %2293 = vmatprep.mubr.msk.f32.mxu0 %vm203_vm0, %v176_v16  ;;  %2305 = vmatprep.mubr.msk.f32.mxu1 %vm203_vm0, %v184_v17 }
  0x2d   : > { %2294 = vmatmul.mubr.msk.f32.gmra.mxu0 %vm203_vm0, %v177_v18  ;;  %2306 = vmatmul.mubr.msk.f32.gmra.mxu1 %vm203_vm0, %v185_v19 }
  0x2e   : > { %2296 = vmatprep.mubr.msk.f32.mxu0 %vm203_vm0, %v178_v20  ;;  %2308 = vmatprep.mubr.msk.f32.mxu1 %vm203_vm0, %v186_v21 }
  0x31   : > { %2297 = vmatmul.mubr.msk.f32.gmra.mxu0 %vm203_vm0, %v179_v22  ;;  %2309 = vmatmul.mubr.msk.f32.gmra.mxu1 %vm203_vm0, %v187_v23 }
  0xe5   : > { %v2289_v25 = vpop.f32.mrf.mxu0  ;;  %v2301_v26 = vpop.f32.mrf.mxu1 }
  0xe6   : > { %v2711_v27 = vadd.f32 %v2289_v25, %v2708_v24  ;;  %v2714_v28 = vadd.f32 %v2301_v26, %v2708_v24 }
  0xe7   : > { %v318_v29 = vpop.f32.mrf.mxu0  ;;  %v358_v48 = vpop.f32.mrf.mxu1 }
  0xe8   : > { %v501_v30 = vand.u32 2147483647, %v2711_v27  ;;  %v504_v31 = vand.u32 2139095040, %v2711_v27  ;;  %v1333_v32 = vand.u32 2147483647, %v2714_v28  ;;  %v1336_v33 = vand.u32 2139095040, %v2714_v28 }
  0xe9   : > { %v2723_v36 = vadd.f32 %v2708_v24, %v318_v29  ;;  %v2730_v54 = vadd.f32 %v2708_v24, %v358_v48  ;;  %vm503_vm14 = vcmp.lt.s32.totalorder %v2711_v27, 0 }
  0xea   : > { %v505_v34 = vshrl.u32 %v504_v31, 23  ;;  %v508_v35 = vand.u32 8388607, %v501_v30  ;;  %v1337_v37 = vshrl.u32 %v1336_v33, 23  ;;  %v1340_v38 = vand.u32 8388607, %v1333_v32 }
  0xeb   : > { %v400_v41 = vand.u32 2139095040, %v2723_v36  ;;  %v397_v46 = vand.u32 2147483647, %v2723_v36  ;;  %vm2835_vm15 = vcmp.le.f32.partialorder %v501_v30, 0.7853982 }
  0xec   : > { %v2181_v39 = vadd.s32 4294967169, %v505_v34  ;;  %v2213_v40 = vadd.s32 4294967169, %v1337_v37  ;;  %v509_v42 = vor.u32 8388608, %v508_v35  ;;  %v1341_v44 = vor.u32 8388608, %v1340_v38 }
  0xed   : > { %v401_v47 = vshrl.u32 %v400_v41, 23  ;;  %v2740_v58 = vand.u32 8388607, %v397_v46 }
  0xee   : > { %v511_v43 = vadd.s32 1, %v2181_v39  ;;  %v1343_v45 = vadd.s32 1, %v2213_v40  ;;  %v2732_v55 = vshll.u32 %v509_v42, 8  ;;  %v2736_v57 = vshll.u32 %v1341_v44, 8 }
  0xef   : > { %v2177_v50 = vadd.s32 4294967169, %v401_v47 }
  0xf0   : > { %vm512_vm1 = vcmp.gt.s32.totalorder %v511_v43, 0  ;;  %vm1344_vm2 = vcmp.gt.s32.totalorder %v1343_v45, 0 }
  0xf1   : > { %v513_v49 = vsel %vm512_vm1, %v511_v43, 0  ;;  %v1345_v53 = vsel %vm1344_vm2, %v1343_v45, 0  ;;  %v2743_v63 = vadd.s32 1, %v2177_v50 }
  0xf2   : > { %v514_v51 = vshrl.u32 %v513_v49, 5  ;;  %v515_v52 = vand.u32 31, %v513_v49  ;;  %v2734_v56 = vshrl.u32 %v1345_v53, 5  ;;  %v1347_v62 = vand.u32 31, %v1345_v53 }
  0xf3   : > { %vm408_vm12 = vcmp.gt.s32.totalorder %v2743_v63, 0 }
  0xf4   : > { %v516_v59 = vsub.s32 32, %v515_v52  ;;  %v518_v61 = vshll.u32 %v2566_v60, %v515_v52  ;;  %v521_v1 = vshll.u32 %v2567_v0, %v515_v52  ;;  %v524_v3 = vshll.u32 %v2568_v2, %v515_v52 }
  0xf5   : > { %v527_v5 = vshll.u32 %v2569_v4, %v515_v52  ;;  %v530_v7 = vshll.u32 %v2570_v6, %v515_v52  ;;  %vm533_vm3 = vcmp.lt.s32.totalorder %v514_v51, 1  ;;  %vm534_vm4 = vcmp.lt.s32.totalorder %v514_v51, 2 }
  0xf6   : > { %v519_v8 = vshrl.u32 %v2567_v0, %v516_v59  ;;  %v522_v9 = vshrl.u32 %v2568_v2, %v516_v59  ;;  %v525_v10 = vshrl.u32 %v2569_v4, %v516_v59  ;;  %v517_v11 = vshrl.u32 %v2566_v60, %v516_v59 }
  0xf7   : > { %v528_v12 = vshrl.u32 %v2570_v6, %v516_v59  ;;  %v531_v14 = vshrl.u32 %v2571_v13, %v516_v59  ;;  %v1348_v18 = vsub.s32 32, %v1347_v62  ;;  %vm535_vm5 = vcmp.lt.s32.totalorder %v514_v51, 3 }
  0xf8   : > { %v520_v15 = vor.u32 %v519_v8, %v518_v61  ;;  %v523_v16 = vor.u32 %v522_v9, %v521_v1  ;;  %v526_v17 = vor.u32 %v525_v10, %v524_v3  ;;  %vm536_vm6 = vcmp.lt.s32.totalorder %v514_v51, 4 }
  0xf9   : > { %v529_v19 = vor.u32 %v528_v12, %v527_v5  ;;  %v532_v20 = vor.u32 %v531_v14, %v530_v7  ;;  %v1350_v33 = vshll.u32 %v2566_v60, %v1347_v62  ;;  %v1351_v37 = vshrl.u32 %v2567_v0, %v1348_v18 }
  0xfa   : > { %v537_v21 = vsel %vm533_vm3, %v517_v11, %v520_v15  ;;  %v538_v22 = vsel %vm536_vm6, %v526_v17, 2102212464  ;;  %v541_v23 = vsel %vm533_vm3, %v520_v15, %v523_v16  ;;  %v545_v25 = vsel %vm533_vm3, %v523_v16, %v526_v17 }
  0xfb   : > { %v539_v26 = vsel %vm535_vm5, %v523_v16, %v538_v22  ;;  %v542_v29 = vsel %vm536_vm6, %v529_v19, 920167782  ;;  %v546_v31 = vsel %vm536_vm6, %v532_v20, 1326507024  ;;  %v1353_v38 = vshll.u32 %v2567_v0, %v1347_v62 }
  0xfc   : > { %v543_v34 = vsel %vm535_vm5, %v526_v17, %v542_v29  ;;  %v547_v35 = vsel %vm535_vm5, %v529_v19, %v546_v31  ;;  %v540_v39 = vsel %vm534_vm4, %v537_v21, %v539_v26  ;;  %v1354_v42 = vshrl.u32 %v2568_v2, %v1348_v18 }
  0xfd   : > { %v544_v40 = vsel %vm534_vm4, %v541_v23, %v543_v34  ;;  %v548_v41 = vsel %vm534_vm4, %v545_v25, %v547_v35  ;;  %v1352_v48 = vor.u32 %v1351_v37, %v1350_v33  ;;  %v1356_v50 = vshll.u32 %v2568_v2, %v1347_v62 }
  0xfe   : > { %v2766_v43 = vmul.u32.u64.low %v2732_v55, %v548_v41  ;;  %v2767_v44 = vmul.u32.u64.high %v2732_v55, %v548_v41, %v2766_v43  ;;  %v2770_v45 = vmul.u32.u64.low %v2732_v55, %v544_v40  ;;  %v2771_v47 = vmul.u32.u64.high %v2732_v55, %v544_v40, %v2770_v45 }
  0xff   : > { %v1355_v49 = vor.u32 %v1354_v42, %v1353_v38  ;;  %v1357_v52 = vshrl.u32 %v2569_v4, %v1348_v18  ;;  %v1349_v53 = vshrl.u32 %v2566_v60, %v1348_v18  ;;  %v1359_v51 = vshll.u32 %v2569_v4, %v1347_v62 }
 0x100   : > { %v1360_v59 = vshrl.u32 %v2570_v6, %v1348_v18  ;;  %v1363_v61 = vshrl.u32 %v2571_v13, %v1348_v18  ;;  %v556_v1 = vmul.u32 %v2732_v55, %v540_v39  ;;  %v1362_v5 = vshll.u32 %v2570_v6, %v1347_v62 }
 0x101   : > { %v1358_v3 = vor.u32 %v1357_v52, %v1356_v50  ;;  %vm1365_vm7 = vcmp.lt.s32.totalorder %v2734_v56, 1  ;;  %vm558_vm8 = vc.u32 %v2767_v44, %v2770_v45  ;;  %v559_v7 = vadd.s32 1, %v2771_v47 }
 0x102   : > { %v1361_v8 = vor.u32 %v1360_v59, %v1359_v51  ;;  %vm1366_vm9 = vcmp.lt.s32.totalorder %v2734_v56, 2  ;;  %v1364_v9 = vor.u32 %v1363_v61, %v1362_v5  ;;  %vm1367_vm10 = vcmp.lt.s32.totalorder %v2734_v56, 3 }
 0x103   : > { %vm1368_vm11 = vcmp.lt.s32.totalorder %v2734_v56, 4  ;;  %v1373_v10 = vsel %vm1365_vm7, %v1352_v48, %v1355_v49  ;;  %v560_v55 = vsel %vm558_vm8, %v559_v7, %v2771_v47  ;;  %v1377_v62 = vsel %vm1365_vm7, %v1355_v49, %v1358_v3 }
 0x104   : > { %v1370_v11 = vsel %vm1368_vm11, %v1358_v3, 2102212464  ;;  %v1374_v12 = vsel %vm1368_vm11, %v1361_v8, 920167782  ;;  %v561_v14 = vadd.s32 %v560_v55, %v556_v1  ;;  %v1369_v15 = vsel %vm1365_vm7, %v1349_v53, %v1352_v48 }
 0x105   : > { %v1375_v16 = vsel %vm1367_vm10, %v1358_v3, %v1374_v12  ;;  %v1378_v17 = vsel %vm1368_vm11, %v1364_v9, 1326507024  ;;  %v1371_v18 = vsel %vm1367_vm10, %v1355_v49, %v1370_v11  ;;  %v409_v31 = vsel %vm408_vm12, %v2743_v63, 0 }
 0x106   : > { %v1376_v19 = vsel %vm1366_vm9, %v1373_v10, %v1375_v16  ;;  %v1379_v20 = vsel %vm1367_vm10, %v1361_v8, %v1378_v17  ;;  %v562_v21 = vadd.s32 536870912, %v561_v14  ;;  %v1372_v34 = vsel %vm1366_vm9, %v1369_v15, %v1371_v18 }
 0x107   : > { %v1380_v22 = vsel %vm1366_vm9, %v1377_v62, %v1379_v20  ;;  %v2794_v23 = vmul.u32.u64.low %v2736_v57, %v1376_v19  ;;  %v2795_v25 = vmul.u32.u64.high %v2736_v57, %v1376_v19, %v2794_v23  ;;  %v411_v35 = vand.u32 31, %v409_v31 }
 0x108   : > { %v2799_v26 = vmul.u32.u64.low %v2736_v57, %v1380_v22  ;;  %v2800_v29 = vmul.u32.u64.high %v2736_v57, %v1380_v22, %v2799_v26  ;;  %v563_v33 = vshrl.u32 %v562_v21, 30  ;;  %v1232_v37 = vand.u32 2139095040, %v2730_v54 }
 0x109   : > { %v1391_v39 = vadd.s32 1, %v2795_v25  ;;  %v405_v40 = vor.u32 8388608, %v2740_v58  ;;  %v1388_v41 = vmul.u32 %v2736_v57, %v1372_v34  ;;  %v412_v42 = vsub.s32 32, %v411_v35 }
 0x10a   : > { %v564_v38 = vshll.u32 %v563_v33, 30  ;;  %vm1390_vm13 = vc.u32 %v2800_v29, %v2794_v23  ;;  %v1233_v56 = vshrl.u32 %v1232_v37, 23  ;;  %v557_v48 = vadd.s32 %v2770_v45, %v2767_v44 }
 0x10b   : > { %v1392_v63 = vsel %vm1390_vm13, %v1391_v39, %v2795_v25  ;;  %v2817_v50 = vshll.u32 %v405_v40, 8  ;;  %v1229_v57 = vand.u32 2147483647, %v2730_v54  ;;  %v2820_v52 = vshrl.u32 %v409_v31, 5 }
 0x10c   : > { %v2811_v43 = vsub.s32 %v561_v14, %v564_v38  ;;  %v1393_v47 = vadd.s32 %v1392_v63, %v1388_v41  ;;  %v415_v53 = vshrl.u32 %v2567_v0, %v412_v42  ;;  %v418_v51 = vshrl.u32 %v2568_v2, %v412_v42 }
 0x10d   : > { %v421_v61 = vshrl.u32 %v2569_v4, %v412_v42  ;;  %v424_v1 = vshrl.u32 %v2570_v6, %v412_v42  ;;  %v2827_v44 = vadd.s32 4294967169, %v1233_v56  ;;  %v587_v45 = vsub.s32 4, %v563_v33 }
 0x10e   : > { %v567_v49 = vsub.s32 0, %v2811_v43  ;;  %v1394_v58 = vadd.s32 536870912, %v1393_v47  ;;  %v414_v5 = vshll.u32 %v2566_v60, %v411_v35  ;;  %v417_v7 = vshll.u32 %v2567_v0, %v411_v35 }
 0x10f   : > { %v420_v10 = vshll.u32 %v2568_v2, %v411_v35  ;;  %v423_v55 = vshll.u32 %v2569_v4, %v411_v35  ;;  %v427_v11 = vshrl.u32 %v2571_v13, %v412_v42  ;;  %v2845_v15 = vand.u32 8388607, %v1229_v57 }
 0x110   : > { %v2182_v59 = vmin.u32 %v567_v49, %v2811_v43  ;;  %v2829_v3 = vshrl.u32 %v1394_v58, 30  ;;  %v416_v62 = vor.u32 %v415_v53, %v414_v5  ;;  %v419_v14 = vor.u32 %v418_v51, %v417_v7 }
 0x111   : > { %v422_v30 = vor.u32 %v421_v61, %v420_v10  ;;  %v425_v17 = vor.u32 %v424_v1, %v423_v55  ;;  %v426_v18 = vshll.u32 %v2570_v6, %v411_v35  ;;  %v588_v19 = vsel %vm503_vm14, %v587_v45, %v563_v33 }
 0x112   : > { %v569_v9 = vclz %v2182_v59  ;;  %v1396_v12 = vshll.u32 %v2829_v3, 30  ;;  %v413_v21 = vshrl.u32 %v2566_v60, %v412_v42  ;;  %vm429_vm0 = vcmp.lt.s32.totalorder %v2820_v52, 1 }
 0x113   : > { %v428_v22 = vor.u32 %v427_v11, %v426_v18  ;;  %vm430_vm2 = vcmp.lt.s32.totalorder %v2820_v52, 2  ;;  %vm431_vm3 = vcmp.lt.s32.totalorder %v2820_v52, 3  ;;  %vm1335_vm4 = vcmp.lt.s32.totalorder %v2714_v28, 0 }
 0x114   : > { %v2183_v16 = vadd.s32 4294967294, %v569_v9  ;;  %v2850_v20 = vsub.s32 %v1393_v47, %v1396_v12  ;;  %vm432_vm5 = vcmp.lt.s32.totalorder %v2820_v52, 4  ;;  %v437_v31 = vsel %vm429_vm0, %v416_v62, %v419_v14 }
 0x115   : > { %v434_v35 = vsel %vm432_vm5, %v422_v30, 2102212464  ;;  %v438_v37 = vsel %vm432_vm5, %v425_v17, 920167782  ;;  %v441_v41 = vsel %vm429_vm0, %v419_v14, %v422_v30  ;;  %v442_v47 = vsel %vm432_vm5, %v428_v22, 1326507024 }
 0x116   : > { %vm2184_vm1 = vcmp.lt.s32.totalorder %v2183_v16, 0  ;;  %v1399_v26 = vsub.s32 0, %v2850_v20  ;;  %v439_v40 = vsel %vm431_vm3, %v422_v30, %v438_v37  ;;  %v590_v49 = vsel %vm2835_vm15, 0, %v588_v19 }
 0x117   : > { %v572_v25 = vsel %vm2184_vm1, 0, %v2183_v16  ;;  %v440_v56 = vsel %vm430_vm2, %v437_v31, %v439_v40  ;;  %vm2873_vm6 = vcmp.le.f32.partialorder %v1333_v32, 0.7853982  ;;  %v433_v53 = vsel %vm429_vm0, %v413_v21, %v416_v62 }
 0x118   : > { %v573_v33 = vsub.s32 32, %v572_v25  ;;  %v577_v34 = vsub.s32 4294967266, %v572_v25  ;;  %v574_v38 = vshll.u32 %v2811_v43, %v572_v25  ;;  %v2214_v39 = vmin.u32 %v1399_v26, %v2850_v20 }
 0x119   : > { %v1419_v61 = vsub.s32 4, %v2829_v3  ;;  %v443_v1 = vsel %vm431_vm3, %v425_v17, %v442_v47  ;;  %v2887_v5 = vmul.u32.u64.low %v2817_v50, %v440_v56  ;;  %v2888_v7 = vmul.u32.u64.high %v2817_v50, %v440_v56, %v2887_v5 }
 0x11a   : > { %v575_v42 = vshrl.u32 %v557_v48, %v573_v33  ;;  %v578_v63 = vadd.s32 127, %v577_v34  ;;  %v1401_v58 = vclz %v2214_v39  ;;  %v435_v48 = vsel %vm431_vm3, %v419_v14, %v434_v35  ;;  %v2292_v33 = vpop.f32.mrf.mxu0 }
 0x11b   : > { %v444_v32 = vsel %vm430_vm2, %v441_v41, %v443_v1  ;;  %v436_v10 = vsel %vm430_vm2, %v433_v53, %v435_v48  ;;  %v594_v12 = vadd.s32 3, %v590_v49  ;;  %v1389_v62 = vadd.s32 %v2794_v23, %v2800_v29 }
 0x11c   : > { %v576_v51 = vor.u32 %v575_v42, %v574_v38  ;;  %v579_v59 = vshll.u32 %v578_v63, 23  ;;  %v2215_v45 = vadd.s32 4294967294, %v1401_v58  ;;  %v1239_v14 = vadd.s32 1, %v2827_v44 }
 0x11d   : > { %v2894_v55 = vmul.u32.u64.low %v2817_v50, %v444_v32  ;;  %v2895_v11 = vmul.u32.u64.high %v2817_v50, %v444_v32, %v2894_v55  ;;  %v1420_v18 = vsel %vm1335_vm4, %v1419_v61, %v2829_v3  ;;  %v452_v21 = vmul.u32 %v2817_v50, %v436_v10 }
 0x11e   : > { %v580_v9 = vor.u32 4788187, %v579_v59  ;;  %vm2216_vm7 = vcmp.lt.s32.totalorder %v2215_v45, 0  ;;  %v583_v30 = vcvt.s32.f32 %v576_v51  ;;  %v455_v22 = vadd.s32 1, %v2888_v7 }
 0x11f   : > { %v1404_v17 = vsel %vm2216_vm7, 0, %v2215_v45  ;;  %vm454_vm8 = vc.u32 %v2895_v11, %v2887_v5  ;;  %vm1240_vm9 = vcmp.gt.s32.totalorder %v1239_v14, 0  ;;  %v1422_v34 = vsel %vm2873_vm6, 0, %v1420_v18 }
 0x120   : > { %v581_v16 = vand.u32 2147483647, %v580_v9  ;;  %v1405_v52 = vsub.s32 32, %v1404_v17  ;;  %v1409_v19 = vsub.s32 4294967266, %v1404_v17  ;;  %v1406_v26 = vshll.u32 %v2850_v20, %v1404_v17 }
 0x121   : > { %v456_v44 = vsel %vm454_vm8, %v455_v22, %v2888_v7  ;;  %v1241_v31 = vsel %vm1240_vm9, %v1239_v14, 0  ;;  %v2914_v41 = vadd.f32 %v2292_v33, %v2708_v24  ;;  %v2919_v63 = vand.u32 3, %v594_v12 }
 0x122   : > { %v584_v25 = vmul.f32 %v583_v30, %v581_v16  ;;  %v1407_v23 = vshrl.u32 %v1389_v62, %v1405_v52  ;;  %v1410_v29 = vadd.s32 127, %v1409_v19  ;;  %v457_v50 = vadd.s32 %v456_v44, %v452_v21 }
 0x123   : > { %v1243_v35 = vand.u32 31, %v1241_v31  ;;  %v2921_v47 = vadd.s32 3, %v1422_v34  ;;  %v1237_v58 = vor.u32 8388608, %v2845_v15  ;;  %vm399_vm10 = vcmp.lt.s32.totalorder %v2723_v36, 0 }
 0x124   : > { %v585_v3 = vxor.u32 2147483648, %v584_v25  ;;  %v1408_v37 = vor.u32 %v1407_v23, %v1406_v26  ;;  %v1411_v38 = vshll.u32 %v1410_v29, 23  ;;  %v458_v39 = vadd.s32 536870912, %v457_v50 }
 0x125   : > { %v1244_v40 = vsub.s32 32, %v1243_v35  ;;  %v2927_v61 = vshrl.u32 %v1241_v31, 5  ;;  %v1246_v1 = vshll.u32 %v2566_v60, %v1243_v35  ;;  %v1249_v7 = vshll.u32 %v2567_v0, %v1243_v35 }
 0x126   : > { %v586_v20 = vsel %vm503_vm14, %v585_v3, %v584_v25  ;;  %v1412_v56 = vor.u32 4788187, %v1411_v38  ;;  %v459_v49 = vshrl.u32 %v458_v39, 30  ;;  %v1415_v51 = vcvt.s32.f32 %v1408_v37 }
 0x127   : > { %v589_v42 = vsel %vm2835_vm15, %v2711_v27, %v586_v20  ;;  %v1247_v53 = vshrl.u32 %v2567_v0, %v1244_v40  ;;  %v1250_v59 = vshrl.u32 %v2568_v2, %v1244_v40  ;;  %v1253_v45 = vshrl.u32 %v2569_v4, %v1244_v40 }
 0x128   : > { %2438 = vcosq.f32 %v589_v42  ;;  %v1413_v48 = vand.u32 2147483647, %v1412_v56  ;;  %v460_v8 = vshll.u32 %v459_v49, 30  ;;  %v1255_v15 = vshll.u32 %v2569_v4, %v1243_v35 }
 0x129   : > { %2440 = vsinq.f32 %v589_v42  ;;  %v1256_v9 = vshrl.u32 %v2570_v6, %v1244_v40  ;;  %v1248_v55 = vor.u32 %v1247_v53, %v1246_v1  ;;  %v1252_v12 = vshll.u32 %v2568_v2, %v1243_v35 }
 0x12a   : > { %v1416_v32 = vmul.f32 %v1415_v51, %v1413_v48  ;;  %v2934_v10 = vsub.s32 %v457_v50, %v460_v8  ;;  %v712_v62 = vand.u32 2139095040, %v2914_v41  ;;  %v1251_v16 = vor.u32 %v1250_v59, %v1249_v7 }
 0x12b   : > { %v1257_v30 = vor.u32 %v1256_v9, %v1255_v15  ;;  %v1259_v17 = vshrl.u32 %v2571_v13, %v1244_v40  ;;  %v453_v18 = vadd.s32 %v2887_v5, %v2895_v11  ;;  %v1254_v19 = vor.u32 %v1253_v45, %v1252_v12 }
 0x12c   : > { %v1417_v14 = vxor.u32 2147483648, %v1416_v32  ;;  %v463_v52 = vsub.s32 0, %v2934_v10  ;;  %v1258_v21 = vshll.u32 %v2570_v6, %v1243_v35  ;;  %vm600_vm11 = vcmp.eq.s32.totalorder %v2919_v63, 2 }
 0x12d   : > { %v483_v25 = vsub.s32 4, %v459_v49  ;;  %vm1261_vm12 = vcmp.lt.s32.totalorder %v2927_v61, 1  ;;  %v2947_v26 = vshll.u32 %v1237_v58, 8  ;;  %vm597_vm13 = vcmp.eq.s32.totalorder %v2919_v63, 0 }
 0x12e   : > { %v1418_v22 = vsel %vm1335_vm4, %v1417_v14, %v1416_v32  ;;  %v2178_v11 = vmin.u32 %v463_v52, %v2934_v10  ;;  %v1260_v23 = vor.u32 %v1259_v17, %v1258_v21  ;;  %vm1264_vm14 = vcmp.lt.s32.totalorder %v2927_v61, 4 }
 0x12f   : > { %v1421_v5 = vsel %vm2873_vm6, %v2714_v28, %v1418_v22  ;;  %vm596_vm15 = vcmp.lt.s32.totalorder %v2919_v63, 2  ;;  %v1245_v29 = vshrl.u32 %v2566_v60, %v1244_v40  ;;  %v1269_v44 = vsel %vm1261_vm12, %v1248_v55, %v1251_v16 }
 0x130   : > { %2442 = vcosq.f32 %v1421_v5  ;;  %v1270_v31 = vsel %vm1264_vm14, %v1257_v30, 920167782  ;;  %vm593_vm0 = vweird.f32 %v2711_v27  ;;  %vm2964_vm1 = vcmp.le.f32.partialorder %v397_v46, 0.7853982 }
 0x131   : > { %2444 = vsinq.f32 %v1421_v5  ;;  %v465_v33 = vclz %v2178_v11  ;;  %vm1263_vm2 = vcmp.lt.s32.totalorder %v2927_v61, 3  ;;  %v1266_v3 = vsel %vm1264_vm14, %v1254_v19, 2102212464 }
 0x132   : > { %v484_v34 = vsel %vm399_vm10, %v483_v25, %v459_v49  ;;  %vm1262_vm3 = vcmp.lt.s32.totalorder %v2927_v61, 2  ;;  %v1271_v50 = vsel %vm1263_vm2, %v1254_v19, %v1270_v31  ;;  %v1273_v46 = vsel %vm1261_vm12, %v1251_v16, %v1254_v19 }
 0x133   : > { %v2179_v35 = vadd.s32 4294967294, %v465_v33  ;;  %v1265_v37 = vsel %vm1261_vm12, %v1245_v29, %v1248_v55  ;;  %v1272_v38 = vsel %vm1262_vm3, %v1269_v44, %v1271_v50  ;;  %v1274_v20 = vsel %vm1264_vm14, %v1260_v23, 1326507024 }
 0x134   : > { %v1267_v40 = vsel %vm1263_vm2, %v1251_v16, %v1266_v3  ;;  %v1275_v42 = vsel %vm1263_vm2, %v1257_v30, %v1274_v20  ;;  %v2984_v56 = vmul.u32.u64.low %v2947_v26, %v1272_v38  ;;  %v2985_v49 = vmul.u32.u64.high %v2947_v26, %v1272_v38, %v2984_v56 }
 0x135   : > { %v2439_v39 = vpop.eup %2438  ;;  %vm2180_vm4 = vcmp.lt.s32.totalorder %v2179_v35, 0  ;;  %v1276_v48 = vsel %vm1262_vm3, %v1273_v46, %v1275_v42  ;;  %v713_v51 = vshrl.u32 %v712_v62, 23  ;;  %v1268_v9 = vsel %vm1262_vm3, %v1265_v37, %v1267_v40 }
 0x136   : > { %v2441_v58 = vpop.eup %2440  ;;  %v601_v53 = vxor.u32 2147483648, %v2439_v39  ;;  %v468_v8 = vsel %vm2180_vm4, 0, %v2179_v35  ;;  %v2993_v1 = vmul.u32.u64.low %v2947_v26, %v1276_v48  ;;  %v2994_v45 = vmul.u32.u64.high %v2947_v26, %v1276_v48, %v2993_v1 }
 0x137   : > { %v598_v59 = vxor.u32 2147483648, %v2441_v58  ;;  %v469_v7 = vsub.s32 32, %v468_v8  ;;  %v473_v15 = vsub.s32 4294967266, %v468_v8  ;;  %v1427_v12 = vand.u32 3, %v2921_v47  ;;  %v2304_v47 = vpop.f32.mrf.mxu1 }
 0x138   : > { %v602_v32 = vsel %vm600_vm11, %v601_v53, %v2441_v58  ;;  %v1287_v62 = vadd.s32 1, %v2985_v49  ;;  %v2189_v14 = vadd.s32 4294967169, %v713_v51  ;;  %v470_v30 = vshll.u32 %v2934_v10, %v468_v8 }
 0x139   : > { %v599_v55 = vsel %vm597_vm13, %v2439_v39, %v598_v59  ;;  %v471_v17 = vshrl.u32 %v453_v18, %v469_v7  ;;  %v474_v52 = vadd.s32 127, %v473_v15  ;;  %v486_v61 = vsel %vm2964_vm1, 0, %v484_v34 }
 0x13a   : > { %v603_v16 = vsel %vm596_vm15, %v599_v55, %v602_v32  ;;  %v1284_v21 = vmul.u32 %v2947_v26, %v1268_v9  ;;  %vm1286_vm5 = vc.u32 %v2994_v45, %v2984_v56  ;;  %v719_v22 = vadd.s32 1, %v2189_v14 }
 0x13b   : > { %v604_v19 = vsel %vm593_vm0, nan, %v603_v16  ;;  %v472_v63 = vor.u32 %v471_v17, %v470_v30  ;;  %v475_v10 = vshll.u32 %v474_v52, 23  ;;  %v1288_v18 = vsel %vm1286_vm5, %v1287_v62, %v2985_v49 }
 0x13c   : > { %2062 = vst [vmem:[%s3014_s4 + $0x8] sm:$0xff] %v604_v19  ;;  %v1289_v27 = vadd.s32 %v1288_v18, %v1284_v21  ;;  %v709_v25 = vand.u32 2147483647, %v2914_v41  ;;  %vm1432_vm6 = vcmp.eq.s32.totalorder %v1427_v12, 2  ;;  %vm720_vm7 = vcmp.gt.s32.totalorder %v719_v22, 0 }
 0x13d   : > { %v2443_v5 = vpop.eup %2442  ;;  %v476_v11 = vor.u32 4788187, %v475_v10  ;;  %v3020_v26 = vadd.f32 %v2304_v47, %v2708_v24  ;;  %v490_v44 = vadd.s32 3, %v486_v61  ;;  %v721_v33 = vsel %vm720_vm7, %v719_v22, 0 }
 0x13e   : > { %v2445_v23 = vpop.eup %2444  ;;  %v1433_v29 = vxor.u32 2147483648, %v2443_v5  ;;  %v1290_v31 = vadd.s32 536870912, %v1289_v27  ;;  %v479_v50 = vcvt.s32.f32 %v472_v63  ;;  %v723_v46 = vand.u32 31, %v721_v33 }
 0x13f   : > { %v1430_v3 = vxor.u32 2147483648, %v2445_v23  ;;  %v477_v34 = vand.u32 2147483647, %v476_v11  ;;  %vm1429_vm8 = vcmp.eq.s32.totalorder %v1427_v12, 0  ;;  %v716_v38 = vand.u32 8388607, %v709_v25 }
 0x140   : > { %v1434_v35 = vsel %vm1432_vm6, %v1433_v29, %v2445_v23  ;;  %v3022_v37 = vshrl.u32 %v1290_v31, 30  ;;  %vm1428_vm9 = vcmp.lt.s32.totalorder %v1427_v12, 2  ;;  %v724_v40 = vsub.s32 32, %v723_v46 }
 0x141   : > { %v1431_v20 = vsel %vm1429_vm8, %v2443_v5, %v1430_v3  ;;  %v480_v39 = vmul.f32 %v479_v50, %v477_v34  ;;  %vm1425_vm11 = vweird.f32 %v2714_v28  ;;  %v3028_v48 = vand.u32 3, %v490_v44 }
 0x142   : > { %v1435_v42 = vsel %vm1428_vm9, %v1431_v20, %v1434_v35  ;;  %v1292_v49 = vshll.u32 %v3022_v37, 30  ;;  %v727_v51 = vshrl.u32 %v2567_v0, %v724_v40  ;;  %v717_v8 = vor.u32 8388608, %v716_v38 }
 0x143   : > { %v1436_v58 = vsel %vm1425_vm11, nan, %v1435_v42  ;;  %v481_v53 = vxor.u32 2147483648, %v480_v39  ;;  %v730_v1 = vshrl.u32 %v2568_v2, %v724_v40  ;;  %v1544_v32 = vand.u32 2139095040, %v3020_v26 }
 0x144   : > { %2070 = vst [vmem:[%s3014_s4 + $0x48] sm:$0xff] %v1436_v58  ;;  %v3032_v59 = vsub.s32 %v1289_v27, %v1292_v49  ;;  %v722_v7 = vshrl.u32 %v721_v33, 5  ;;  %v726_v15 = vshll.u32 %v2566_v60, %v723_v46  ;;  %v733_v9 = vshrl.u32 %v2569_v4, %v724_v40 }
 0x145   : > { %v482_v28 = vsel %vm399_vm10, %v481_v53, %v480_v39  ;;  %v729_v62 = vshll.u32 %v2567_v0, %v723_v46  ;;  %v732_v14 = vshll.u32 %v2568_v2, %v723_v46  ;;  %v735_v30 = vshll.u32 %v2569_v4, %v723_v46 }
 0x146   : > { %v485_v55 = vsel %vm2964_vm1, %v2723_v36, %v482_v28  ;;  %v1295_v12 = vsub.s32 0, %v3032_v59  ;;  %v728_v16 = vor.u32 %v727_v51, %v726_v15  ;;  %v736_v17 = vshrl.u32 %v2570_v6, %v724_v40 }
 0x147   : > { %2446 = vcosq.f32 %v485_v55  ;;  %v731_v19 = vor.u32 %v730_v1, %v729_v62  ;;  %v734_v61 = vor.u32 %v733_v9, %v732_v14  ;;  %v738_v43 = vshll.u32 %v2570_v6, %v723_v46 }
 0x148   : > { %2448 = vsinq.f32 %v485_v55  ;;  %v2210_v52 = vmin.u32 %v1295_v12, %v3032_v59  ;;  %v737_v21 = vor.u32 %v736_v17, %v735_v30  ;;  %v739_v47 = vshrl.u32 %v2571_v13, %v724_v40 }
 0x149   : > { %v757_v63 = vshll.u32 %v717_v8, 8  ;;  %v725_v18 = vshrl.u32 %v2566_v60, %v724_v40  ;;  %vm741_vm10 = vcmp.lt.s32.totalorder %v722_v7, 1  ;;  %v1545_v22 = vshrl.u32 %v1544_v32, 23 }
 0x14a   : > { %v1297_v10 = vclz %v2210_v52  ;;  %vm1231_vm12 = vcmp.lt.s32.totalorder %v2730_v54, 0  ;;  %v740_v27 = vor.u32 %v739_v47, %v738_v43  ;;  %vm742_vm13 = vcmp.lt.s32.totalorder %v722_v7, 2 }
 0x14b   : > { %vm743_vm14 = vcmp.lt.s32.totalorder %v722_v7, 3  ;;  %vm744_vm15 = vcmp.lt.s32.totalorder %v722_v7, 4  ;;  %v749_v23 = vsel %vm741_vm10, %v728_v16, %v731_v19  ;;  %v745_v44 = vsel %vm741_vm10, %v725_v18, %v728_v16 }
 0x14c   : > { %v2211_v5 = vadd.s32 4294967294, %v1297_v10  ;;  %v746_v11 = vsel %vm744_vm15, %v734_v61, 2102212464  ;;  %v750_v29 = vsel %vm744_vm15, %v737_v21, 920167782  ;;  %v753_v33 = vsel %vm741_vm10, %v731_v19, %v734_v61 }
 0x14d   : > { %v751_v31 = vsel %vm743_vm14, %v734_v61, %v750_v29  ;;  %v754_v3 = vsel %vm744_vm15, %v740_v27, 1326507024  ;;  %vm3055_vm0 = vcmp.le.f32.partialorder %v1229_v57, 0.7853982  ;;  %v747_v50 = vsel %vm743_vm14, %v731_v19, %v746_v11 }
 0x14e   : > { %vm2212_vm1 = vcmp.lt.s32.totalorder %v2211_v5, 0  ;;  %v752_v46 = vsel %vm742_vm13, %v749_v23, %v751_v31  ;;  %v755_v35 = vsel %vm743_vm14, %v737_v21, %v754_v3  ;;  %v1285_v42 = vadd.s32 %v2984_v56, %v2994_v45 }
 0x14f   : > { %v1300_v38 = vsel %vm2212_vm1, 0, %v2211_v5  ;;  %v756_v20 = vsel %vm742_vm13, %v753_v33, %v755_v35  ;;  %v3061_v39 = vmul.u32.u64.low %v757_v63, %v752_v46  ;;  %v3062_v40 = vmul.u32.u64.high %v757_v63, %v752_v46, %v3061_v39 }
 0x150   : > { %v1301_v49 = vsub.s32 32, %v1300_v38  ;;  %v1305_v57 = vsub.s32 4294967266, %v1300_v38  ;;  %v1315_v58 = vsub.s32 4, %v3022_v37  ;;  %v1541_v8 = vand.u32 2147483647, %v3020_v26 }
 0x151   : > { %v3068_v53 = vmul.u32.u64.low %v757_v63, %v756_v20  ;;  %v3069_v51 = vmul.u32.u64.high %v757_v63, %v756_v20, %v3068_v53  ;;  %v2221_v1 = vadd.s32 4294967169, %v1545_v22  ;;  %v1302_v32 = vshll.u32 %v3032_v59, %v1300_v38  ;;  %v328_v22 = vpop.f32.mrf.mxu0 }
 0x152   : > { %v1303_v28 = vshrl.u32 %v1285_v42, %v1301_v49  ;;  %v1306_v15 = vadd.s32 127, %v1305_v57  ;;  %v748_v9 = vsel %vm742_vm13, %v745_v44, %v747_v50  ;;  %vm492_vm2 = vcmp.lt.s32.totalorder %v3028_v48, 2 }
 0x153   : > { %vm493_vm3 = vcmp.eq.s32.totalorder %v3028_v48, 0  ;;  %v767_v56 = vadd.s32 1, %v3062_v40  ;;  %v1551_v45 = vadd.s32 1, %v2221_v1  ;;  %vm496_vm4 = vcmp.eq.s32.totalorder %v3028_v48, 2 }
 0x154   : > { %v2447_v55 = vpop.eup %2446  ;;  %v1304_v12 = vor.u32 %v1303_v28, %v1302_v32  ;;  %v1307_v62 = vshll.u32 %v1306_v15, 23  ;;  %v1316_v59 = vsel %vm1231_vm12, %v1315_v58, %v3022_v37  ;;  %v764_v7 = vmul.u32 %v757_v63, %v748_v9 }
 0x155   : > { %v2449_v14 = vpop.eup %2448  ;;  %v497_v16 = vxor.u32 2147483648, %v2447_v55  ;;  %vm766_vm5 = vc.u32 %v3069_v51, %v3061_v39  ;;  %vm1552_vm6 = vcmp.gt.s32.totalorder %v1551_v45, 0  ;;  %v1548_v19 = vand.u32 8388607, %v1541_v8 }
 0x156   : > { %v494_v30 = vxor.u32 2147483648, %v2449_v14  ;;  %v1308_v17 = vor.u32 4788187, %v1307_v62  ;;  %v768_v52 = vsel %vm766_vm5, %v767_v56, %v3062_v40  ;;  %v1318_v21 = vsel %vm3055_vm0, 0, %v1316_v59 }
 0x157   : > { %v498_v61 = vsel %vm496_vm4, %v497_v16, %v2449_v14  ;;  %v769_v37 = vadd.s32 %v768_v52, %v764_v7  ;;  %v1553_v43 = vsel %vm1552_vm6, %v1551_v45, 0  ;;  %v1311_v10 = vcvt.s32.f32 %v1304_v12 }
 0x158   : > { %v495_v47 = vsel %vm493_vm3, %v2447_v55, %v494_v30  ;;  %v1309_v63 = vand.u32 2147483647, %v1308_v17  ;;  %v1555_v18 = vand.u32 31, %v1553_v43  ;;  %vm489_vm7 = vweird.f32 %v2723_v36 }
 0x159   : > { %v499_v27 = vsel %vm492_vm2, %v495_v47, %v498_v61  ;;  %v770_v5 = vadd.s32 536870912, %v769_v37  ;;  %v1322_v29 = vadd.s32 3, %v1318_v21  ;;  %v1549_v33 = vor.u32 8388608, %v1548_v19 }
 0x15a   : > { %v500_v11 = vsel %vm489_vm7, nan, %v499_v27  ;;  %v1312_v23 = vmul.f32 %v1311_v10, %v1309_v63  ;;  %v1556_v44 = vsub.s32 32, %v1555_v18  ;;  %v1558_v3 = vshll.u32 %v2566_v60, %v1555_v18 }
 0x15b   : > { %2061 = vst [vmem:[%s3014_s4] sm:$0xff] %v500_v11  ;;  %v3094_v31 = vshrl.u32 %v770_v5, 30  ;;  %v3098_v50 = vadd.f32 %v2708_v24, %v328_v22  ;;  %v1561_v48 = vshll.u32 %v2567_v0, %v1555_v18  ;;  %v1564_v20 = vshll.u32 %v2568_v2, %v1555_v18 }
 0x15c   : > { %v1313_v46 = vxor.u32 2147483648, %v1312_v23  ;;  %v1559_v36 = vshrl.u32 %v2567_v0, %v1556_v44  ;;  %v1562_v35 = vshrl.u32 %v2568_v2, %v1556_v44  ;;  %v1565_v40 = vshrl.u32 %v2569_v4, %v1556_v44 }
 0x15d   : > { %v772_v38 = vshll.u32 %v3094_v31, 30  ;;  %v1568_v42 = vshrl.u32 %v2570_v6, %v1556_v44  ;;  %v1554_v24 = vshrl.u32 %v1553_v43, 5  ;;  %v1567_v58 = vshll.u32 %v2569_v4, %v1555_v18 }
 0x15e   : > { %v1314_v49 = vsel %vm1231_vm12, %v1313_v46, %v1312_v23  ;;  %v1560_v57 = vor.u32 %v1559_v36, %v1558_v3  ;;  %v1563_v32 = vor.u32 %v1562_v35, %v1561_v48  ;;  %v1566_v28 = vor.u32 %v1565_v40, %v1564_v20 }
 0x15f   : > { %v1317_v53 = vsel %vm3055_vm0, %v2730_v54, %v1314_v49  ;;  %v3113_v1 = vsub.s32 %v769_v37, %v772_v38  ;;  %v1569_v15 = vor.u32 %v1568_v42, %v1567_v58  ;;  %v1570_v9 = vshll.u32 %v2570_v6, %v1555_v18 }
 0x160   : > { %2450 = vcosq.f32 %v1317_v53  ;;  %v1571_v56 = vshrl.u32 %v2571_v13, %v1556_v44  ;;  %v3117_v45 = vand.u32 3, %v1322_v29  ;;  %vm711_vm8 = vcmp.lt.s32.totalorder %v2914_v41, 0 }
 0x161   : > { %2452 = vsinq.f32 %v1317_v53  ;;  %v775_v55 = vsub.s32 0, %v3113_v1  ;;  %vm1576_vm9 = vcmp.lt.s32.totalorder %v1554_v24, 4  ;;  %v1589_v34 = vshll.u32 %v1549_v33, 8 }
 0x162   : > { %v1572_v12 = vor.u32 %v1571_v56, %v1570_v9  ;;  %v608_v62 = vand.u32 2139095040, %v3098_v50  ;;  %v1557_v14 = vshrl.u32 %v2566_v60, %v1556_v44  ;;  %vm1573_vm11 = vcmp.lt.s32.totalorder %v1554_v24, 1 }
 0x163   : > { %v2190_v59 = vmin.u32 %v775_v55, %v3113_v1  ;;  %v1578_v16 = vsel %vm1576_vm9, %v1566_v28, 2102212464  ;;  %vm1574_vm10 = vcmp.lt.s32.totalorder %v1554_v24, 2  ;;  %v1581_v7 = vsel %vm1573_vm11, %v1560_v57, %v1563_v32 }
 0x164   : > { %v1582_v30 = vsel %vm1576_vm9, %v1569_v15, 920167782  ;;  %v605_v17 = vand.u32 2147483647, %v3098_v50  ;;  %vm1575_vm12 = vcmp.lt.s32.totalorder %v1554_v24, 3  ;;  %v1577_v19 = vsel %vm1573_vm11, %v1557_v14, %v1560_v57 }
 0x165   : > { %v777_v52 = vclz %v2190_v59  ;;  %v1585_v61 = vsel %vm1573_vm11, %v1563_v32, %v1566_v28  ;;  %v1579_v21 = vsel %vm1575_vm12, %v1563_v32, %v1578_v16  ;;  %v1583_v37 = vsel %vm1575_vm12, %v1566_v28, %v1582_v30 }
 0x166   : > { %v1586_v43 = vsel %vm1576_vm9, %v1572_v12, 1326507024  ;;  %v609_v47 = vshrl.u32 %v608_v62, 23  ;;  %v795_v10 = vsub.s32 4, %v3094_v31  ;;  %v1584_v18 = vsel %vm1574_vm10, %v1581_v7, %v1583_v37 }
 0x167   : > { %v2191_v63 = vadd.s32 4294967294, %v777_v52  ;;  %v1587_v22 = vsel %vm1575_vm12, %v1569_v15, %v1586_v43  ;;  %v3131_v5 = vmul.u32.u64.low %v1589_v34, %v1584_v18  ;;  %v3132_v11 = vmul.u32.u64.high %v1589_v34, %v1584_v18, %v3131_v5 }
 0x168   : > { %v1588_v27 = vsel %vm1574_vm10, %v1585_v61, %v1587_v22  ;;  %v2185_v23 = vadd.s32 4294967169, %v609_v47  ;;  %v1580_v29 = vsel %vm1574_vm10, %v1577_v19, %v1579_v21  ;;  %vm1321_vm14 = vweird.f32 %v2730_v54 }
 0x169   : > { %vm2192_vm13 = vcmp.lt.s32.totalorder %v2191_v63, 0  ;;  %v3136_v44 = vmul.u32.u64.low %v1589_v34, %v1588_v27  ;;  %v3137_v33 = vmul.u32.u64.high %v1589_v34, %v1588_v27, %v3136_v44  ;;  %vm1328_vm15 = vcmp.eq.s32.totalorder %v3117_v45, 2 }
 0x16a   : > { %vm3143_vm0 = vcmp.le.f32.partialorder %v709_v25, 0.7853982  ;;  %v780_v46 = vsel %vm2192_vm13, 0, %v2191_v63  ;;  %v615_v36 = vadd.s32 1, %v2185_v23  ;;  %v765_v48 = vadd.s32 %v3061_v39, %v3069_v51  ;;  %v368_v39 = vpop.f32.mrf.mxu1 }
 0x16b   : > { %v781_v35 = vsub.s32 32, %v780_v46  ;;  %v785_v38 = vsub.s32 4294967266, %v780_v46  ;;  %v796_v20 = vsel %vm711_vm8, %v795_v10, %v3094_v31  ;;  %v1596_v40 = vmul.u32 %v1589_v34, %v1580_v29  ;;  %v3167_v34 = vld [vmem:[%s3902_s2] ss:$0 sm:$0xff] }
 0x16c   : > { %v1599_v42 = vadd.s32 1, %v3132_v11  ;;  %v612_v25 = vand.u32 8388607, %v605_v17  ;;  %vm616_vm1 = vcmp.gt.s32.totalorder %v615_v36, 0  ;;  %v782_v24 = vshll.u32 %v3113_v1, %v780_v46 }
 0x16d   : > { %v2451_v49 = vpop.eup %2450  ;;  %v783_v57 = vshrl.u32 %v765_v48, %v781_v35  ;;  %v786_v58 = vadd.s32 127, %v785_v38  ;;  %vm1598_vm2 = vc.u32 %v3137_v33, %v3131_v5  ;;  %v798_v31 = vsel %vm3143_vm0, 0, %v796_v20 }
 0x16e   : > { %v2453_v51 = vpop.eup %2452  ;;  %v1329_v53 = vxor.u32 2147483648, %v2451_v49  ;;  %v1600_v32 = vsel %vm1598_vm2, %v1599_v42, %v3132_v11  ;;  %v617_v28 = vsel %vm616_vm1, %v615_v36, 0  ;;  %vm1325_vm3 = vcmp.eq.s32.totalorder %v3117_v45, 0 }
 0x16f   : > { %v1326_v15 = vxor.u32 2147483648, %v2453_v51  ;;  %v784_v9 = vor.u32 %v783_v57, %v782_v24  ;;  %v787_v56 = vshll.u32 %v786_v58, 23  ;;  %v1601_v55 = vadd.s32 %v1600_v32, %v1596_v40 }
 0x170   : > { %v1330_v1 = vsel %vm1328_vm15, %v1329_v53, %v2453_v51  ;;  %v619_v12 = vand.u32 31, %v617_v28  ;;  %v3170_v62 = vadd.f32 %v3167_v34, %v368_v39  ;;  %vm1324_vm4 = vcmp.lt.s32.totalorder %v3117_v45, 2 }
 0x171   : > { %v1327_v59 = vsel %vm1325_vm3, %v2451_v49, %v1326_v15  ;;  %v788_v14 = vor.u32 4788187, %v787_v56  ;;  %v1602_v16 = vadd.s32 536870912, %v1601_v55  ;;  %v3173_v30 = vadd.s32 3, %v798_v31 }
 0x172   : > { %v1331_v7 = vsel %vm1324_vm4, %v1327_v59, %v1330_v1  ;;  %v613_v52 = vor.u32 8388608, %v612_v25  ;;  %v620_v19 = vsub.s32 32, %v619_v12  ;;  %v791_v37 = vcvt.s32.f32 %v784_v9 }
 0x173   : > { %v1332_v61 = vsel %vm1321_vm14, nan, %v1331_v7  ;;  %v789_v21 = vand.u32 2147483647, %v788_v14  ;;  %v3177_v43 = vshrl.u32 %v1602_v16, 30  ;;  %v1440_v10 = vand.u32 2139095040, %v3170_v62 }
 0x174   : > { %2069 = vst [vmem:[%s3014_s4 + $0x40] sm:$0xff] %v1332_v61  ;;  %v623_v47 = vshrl.u32 %v2567_v0, %v620_v19  ;;  %v626_v45 = vshrl.u32 %v2568_v2, %v620_v19  ;;  %v629_v63 = vshrl.u32 %v2569_v4, %v620_v19  ;;  %v622_v27 = vshll.u32 %v2566_v60, %v619_v12 }
 0x175   : > { %v792_v18 = vmul.f32 %v791_v37, %v789_v21  ;;  %v1604_v22 = vshll.u32 %v3177_v43, 30  ;;  %v625_v54 = vshll.u32 %v2567_v0, %v619_v12  ;;  %v618_v11 = vshrl.u32 %v617_v28, 5 }
 0x176   : > { %v628_v23 = vshll.u32 %v2568_v2, %v619_v12  ;;  %v631_v29 = vshll.u32 %v2569_v4, %v619_v12  ;;  %v632_v44 = vshrl.u32 %v2570_v6, %v620_v19  ;;  %v624_v48 = vor.u32 %v623_v47, %v622_v27 }
 0x177   : > { %v793_v46 = vxor.u32 2147483648, %v792_v18  ;;  %v3190_v36 = vsub.s32 %v1601_v55, %v1604_v22  ;;  %v627_v35 = vor.u32 %v626_v45, %v625_v54  ;;  %v634_v40 = vshll.u32 %v2570_v6, %v619_v12 }
 0x178   : > { %v630_v38 = vor.u32 %v629_v63, %v628_v23  ;;  %v633_v20 = vor.u32 %v632_v44, %v631_v29  ;;  %v635_v42 = vshrl.u32 %v2571_v13, %v620_v19  ;;  %v653_v24 = vshll.u32 %v613_v52, 8 }
 0x179   : > { %v794_v25 = vsel %vm711_vm8, %v793_v46, %v792_v18  ;;  %v1607_v49 = vsub.s32 0, %v3190_v36  ;;  %v1437_v57 = vand.u32 2147483647, %v3170_v62  ;;  %v621_v39 = vshrl.u32 %v2566_v60, %v620_v19 }
 0x17a   : > { %v797_v58 = vsel %vm3143_vm0, %v2914_v41, %v794_v25  ;;  %v636_v51 = vor.u32 %v635_v42, %v634_v40  ;;  %v1441_v53 = vshrl.u32 %v1440_v10, 23  ;;  %vm637_vm5 = vcmp.lt.s32.totalorder %v618_v11, 1 }
 0x17b   : > { %2454 = vcosq.f32 %v797_v58  ;;  %v2222_v31 = vmin.u32 %v1607_v49, %v3190_v36  ;;  %vm640_vm6 = vcmp.lt.s32.totalorder %v618_v11, 4  ;;  %v645_v28 = vsel %vm637_vm5, %v624_v48, %v627_v35 }
 0x17c   : > { %2456 = vsinq.f32 %v797_v58  ;;  %v642_v32 = vsel %vm640_vm6, %v630_v38, 2102212464  ;;  %v646_v15 = vsel %vm640_vm6, %v633_v20, 920167782  ;;  %vm638_vm7 = vcmp.lt.s32.totalorder %v618_v11, 2 }
 0x17d   : > { %v1609_v9 = vclz %v2222_v31  ;;  %vm639_vm8 = vcmp.lt.s32.totalorder %v618_v11, 3  ;;  %v641_v56 = vsel %vm637_vm5, %v621_v39, %v624_v48  ;;  %v649_v1 = vsel %vm637_vm5, %v627_v35, %v630_v38  ;;  %v2295_v39 = vpop.f32.mrf.mxu0 }
 0x17e   : > { %v643_v55 = vsel %vm639_vm8, %v627_v35, %v642_v32  ;;  %v647_v3 = vsel %vm639_vm8, %v630_v38, %v646_v15  ;;  %v650_v12 = vsel %vm640_vm6, %v636_v51, 1326507024  ;;  %v1627_v14 = vsub.s32 4, %v3177_v43 }
 0x17f   : > { %v2223_v59 = vadd.s32 4294967294, %v1609_v9  ;;  %v648_v16 = vsel %vm638_vm7, %v645_v28, %v647_v3  ;;  %v651_v7 = vsel %vm639_vm8, %v633_v20, %v650_v12  ;;  %v644_v52 = vsel %vm638_vm7, %v641_v56, %v643_v55 }
 0x180   : > { %v652_v19 = vsel %vm638_vm7, %v649_v1, %v651_v7  ;;  %v3204_v61 = vmul.u32.u64.low %v653_v24, %v648_v16  ;;  %v3205_v21 = vmul.u32.u64.high %v653_v24, %v648_v16, %v3204_v61  ;;  %v2217_v45 = vadd.s32 4294967169, %v1441_v53 }
 0x181   : > { %vm2224_vm9 = vcmp.lt.s32.totalorder %v2223_v59, 0  ;;  %v3207_v37 = vmul.u32.u64.low %v653_v24, %v652_v19  ;;  %v3208_v47 = vmul.u32.u64.high %v653_v24, %v652_v19, %v3207_v37  ;;  %vm3212_vm11 = vcmp.le.f32.partialorder %v1541_v8, 0.7853982 }
 0x182   : > { %vm1543_vm10 = vcmp.lt.s32.totalorder %v3020_v26, 0  ;;  %v1597_v10 = vadd.s32 %v3131_v5, %v3137_v33  ;;  %v1612_v18 = vsel %vm2224_vm9, 0, %v2223_v59  ;;  %v1447_v11 = vadd.s32 1, %v2217_v45 }
 0x183   : > { %v1613_v22 = vsub.s32 32, %v1612_v18  ;;  %v1617_v27 = vsub.s32 4294967266, %v1612_v18  ;;  %v1628_v54 = vsel %vm1543_vm10, %v1627_v14, %v3177_v43  ;;  %v803_v23 = vand.u32 3, %v3173_v30 }
 0x184   : > { %v660_v29 = vmul.u32 %v653_v24, %v644_v52  ;;  %v663_v8 = vadd.s32 1, %v3205_v21  ;;  %v1444_v44 = vand.u32 8388607, %v1437_v57  ;;  %v1614_v46 = vshll.u32 %v3190_v36, %v1612_v18 }
 0x185   : > { %v1615_v48 = vshrl.u32 %v1597_v10, %v1613_v22  ;;  %v1618_v5 = vadd.s32 127, %v1617_v27  ;;  %vm662_vm12 = vc.u32 %v3208_v47, %v3204_v61  ;;  %v1630_v33 = vsel %vm3212_vm11, 0, %v1628_v54 }
 0x186   : > { %v664_v43 = vsel %vm662_vm12, %v663_v8, %v3205_v21  ;;  %vm1448_vm13 = vcmp.gt.s32.totalorder %v1447_v11, 0  ;;  %vm801_vm14 = vweird.f32 %v2914_v41  ;;  %vm804_vm15 = vcmp.lt.s32.totalorder %v803_v23, 2 }
 0x187   : > { %v1616_v35 = vor.u32 %v1615_v48, %v1614_v46  ;;  %v1619_v30 = vshll.u32 %v1618_v5, 23  ;;  %v665_v38 = vadd.s32 %v664_v43, %v660_v29  ;;  %v1449_v20 = vsel %vm1448_vm13, %v1447_v11, 0 }
 0x188   : > { %v2455_v40 = vpop.eup %2454  ;;  %vm805_vm0 = vcmp.eq.s32.totalorder %v803_v23, 0  ;;  %v1451_v36 = vand.u32 31, %v1449_v20  ;;  %v1445_v58 = vor.u32 8388608, %v1444_v44  ;;  %vm808_vm1 = vcmp.eq.s32.totalorder %v803_v23, 2 }
 0x189   : > { %v2457_v42 = vpop.eup %2456  ;;  %v809_v25 = vxor.u32 2147483648, %v2455_v40  ;;  %v1620_v49 = vor.u32 4788187, %v1619_v30  ;;  %v666_v24 = vadd.s32 536870912, %v665_v38  ;;  %v3232_v53 = vadd.s32 3, %v1630_v33 }
 0x18a   : > { %v806_v51 = vxor.u32 2147483648, %v2457_v42  ;;  %v1452_v31 = vsub.s32 32, %v1451_v36  ;;  %v1623_v15 = vcvt.s32.f32 %v1616_v35  ;;  %v3236_v55 = vadd.s32 %v3204_v61, %v3208_v47 }
 0x18b   : > { %v810_v32 = vsel %vm808_vm1, %v809_v25, %v2457_v42  ;;  %v1621_v28 = vand.u32 2147483647, %v1620_v49  ;;  %v667_v9 = vshrl.u32 %v666_v24, 30  ;;  %v3240_v1 = vadd.f32 %v3167_v34, %v2295_v39 }
 0x18c   : > { %v807_v56 = vsel %vm805_vm0, %v2455_v40, %v806_v51  ;;  %v1455_v3 = vshrl.u32 %v2567_v0, %v1452_v31  ;;  %v3243_v16 = vshll.u32 %v1445_v58, 8  ;;  %v1454_v52 = vshll.u32 %v2566_v60, %v1451_v36 }
 0x18d   : > { %v811_v12 = vsel %vm804_vm15, %v807_v56, %v810_v32  ;;  %v1624_v59 = vmul.f32 %v1623_v15, %v1621_v28  ;;  %v668_v14 = vshll.u32 %v667_v9, 30  ;;  %v1458_v19 = vshrl.u32 %v2568_v2, %v1452_v31 }
 0x18e   : > { %v812_v7 = vsel %vm801_vm14, nan, %v811_v12  ;;  %v1461_v61 = vshrl.u32 %v2569_v4, %v1452_v31  ;;  %v1450_v47 = vshrl.u32 %v1449_v20, 5  ;;  %v1457_v45 = vshll.u32 %v2567_v0, %v1451_v36 }
 0x18f   : > { %2064 = vst [vmem:[%s3014_s4 + $0x18] sm:$0xff] %v812_v7  ;;  %v1625_v21 = vxor.u32 2147483648, %v1624_v59  ;;  %v3251_v37 = vsub.s32 %v665_v38, %v668_v14  ;;  %v1456_v10 = vor.u32 %v1455_v3, %v1454_v52  ;;  %v1460_v18 = vshll.u32 %v2568_v2, %v1451_v36 }
 0x190   : > { %v1463_v22 = vshll.u32 %v2569_v4, %v1451_v36  ;;  %v1464_v41 = vshrl.u32 %v2570_v6, %v1452_v31  ;;  %vm607_vm2 = vcmp.lt.s32.totalorder %v3098_v50, 0  ;;  %v1466_v11 = vshll.u32 %v2570_v6, %v1451_v36 }
 0x191   : > { %v1626_v27 = vsel %vm1543_vm10, %v1625_v21, %v1624_v59  ;;  %v671_v54 = vsub.s32 0, %v3251_v37  ;;  %v1467_v23 = vshrl.u32 %v2571_v13, %v1452_v31  ;;  %v1459_v8 = vor.u32 %v1458_v19, %v1457_v45 }
 0x192   : > { %v1629_v29 = vsel %vm3212_vm11, %v3020_v26, %v1626_v27  ;;  %v1462_v44 = vor.u32 %v1461_v61, %v1460_v18  ;;  %v1465_v46 = vor.u32 %v1464_v41, %v1463_v22  ;;  %v920_v33 = vand.u32 2139095040, %v3240_v1 }
 0x193   : > { %2458 = vcosq.f32 %v1629_v29  ;;  %v2186_v48 = vmin.u32 %v671_v54, %v3251_v37  ;;  %v1468_v5 = vor.u32 %v1467_v23, %v1466_v11  ;;  %v691_v43 = vsub.s32 4, %v667_v9 }
 0x194   : > { %2460 = vsinq.f32 %v1629_v29  ;;  %v1453_v35 = vshrl.u32 %v2566_v60, %v1452_v31  ;;  %vm1469_vm3 = vcmp.lt.s32.totalorder %v1450_v47, 1  ;;  %vm1470_vm4 = vcmp.lt.s32.totalorder %v1450_v47, 2 }
 0x195   : > { %v673_v30 = vclz %v2186_v48  ;;  %vm1471_vm5 = vcmp.lt.s32.totalorder %v1450_v47, 3  ;;  %vm1472_vm6 = vcmp.lt.s32.totalorder %v1450_v47, 4  ;;  %v1477_v38 = vsel %vm1469_vm3, %v1456_v10, %v1459_v8 }
 0x196   : > { %v1474_v63 = vsel %vm1472_vm6, %v1462_v44, 2102212464  ;;  %v1478_v20 = vsel %vm1472_vm6, %v1465_v46, 920167782  ;;  %v1481_v40 = vsel %vm1469_vm3, %v1459_v8, %v1462_v44  ;;  %v1473_v42 = vsel %vm1469_vm3, %v1453_v35, %v1456_v10  ;;  %v2307_v35 = vpop.f32.mrf.mxu1 }
 0x197   : > { %v2187_v36 = vadd.s32 4294967294, %v673_v30  ;;  %v1479_v25 = vsel %vm1471_vm5, %v1462_v44, %v1478_v20  ;;  %v1482_v49 = vsel %vm1472_vm6, %v1468_v5, 1326507024  ;;  %v1475_v24 = vsel %vm1471_vm5, %v1459_v8, %v1474_v63 }
 0x198   : > { %v1480_v58 = vsel %vm1470_vm4, %v1477_v38, %v1479_v25  ;;  %v1483_v39 = vsel %vm1471_vm5, %v1465_v46, %v1482_v49  ;;  %v921_v51 = vshrl.u32 %v920_v33, 23  ;;  %v692_v56 = vsel %vm607_vm2, %v691_v43, %v667_v9 }
 0x199   : > { %vm2188_vm7 = vcmp.lt.s32.totalorder %v2187_v36, 0  ;;  %v1484_v31 = vsel %vm1470_vm4, %v1481_v40, %v1483_v39  ;;  %v3272_v32 = vmul.u32.u64.low %v3243_v16, %v1480_v58  ;;  %v3273_v28 = vmul.u32.u64.high %v3243_v16, %v1480_v58, %v3272_v32 }
 0x19a   : > { %v676_v15 = vsel %vm2188_vm7, 0, %v2187_v36  ;;  %v3279_v3 = vmul.u32.u64.low %v3243_v16, %v1484_v31  ;;  %v3280_v12 = vmul.u32.u64.high %v3243_v16, %v1484_v31, %v3279_v3  ;;  %v1476_v7 = vsel %vm1470_vm4, %v1473_v42, %v1475_v24 }
 0x19b   : > { %v677_v59 = vsub.s32 32, %v676_v15  ;;  %v681_v14 = vsub.s32 4294967266, %v676_v15  ;;  %v2197_v52 = vadd.s32 4294967169, %v921_v51  ;;  %vm3285_vm8 = vcmp.le.f32.partialorder %v605_v17, 0.7853982 }
 0x19c   : > { %v678_v61 = vshll.u32 %v3251_v37, %v676_v15  ;;  %v917_v21 = vand.u32 2147483647, %v3240_v1  ;;  %v1495_v10 = vadd.s32 1, %v3273_v28  ;;  %v1635_v47 = vand.u32 3, %v3232_v53 }
 0x19d   : > { %v679_v9 = vshrl.u32 %v3236_v55, %v677_v59  ;;  %v682_v45 = vadd.s32 127, %v681_v14  ;;  %v927_v18 = vadd.s32 1, %v2197_v52  ;;  %v694_v22 = vsel %vm3285_vm8, 0, %v692_v56 }
 0x19e   : > { %v1492_v17 = vmul.u32 %v3243_v16, %v1476_v7  ;;  %vm1494_vm9 = vc.u32 %v3280_v12, %v3272_v32  ;;  %vm1633_vm10 = vweird.f32 %v3020_v26  ;;  %v698_v8 = vadd.s32 3, %v694_v22 }
 0x19f   : > { %v680_v41 = vor.u32 %v679_v9, %v678_v61  ;;  %v683_v37 = vshll.u32 %v682_v45, 23  ;;  %v1496_v27 = vsel %vm1494_vm9, %v1495_v10, %v3273_v28  ;;  %vm928_vm11 = vcmp.gt.s32.totalorder %v927_v18, 0 }
 0x1a0   : > { %v2459_v55 = vpop.eup %2458  ;;  %v1497_v54 = vadd.s32 %v1496_v27, %v1492_v17  ;;  %v929_v11 = vsel %vm928_vm11, %v927_v18, 0  ;;  %v924_v16 = vand.u32 8388607, %v917_v21  ;;  %vm1640_vm12 = vcmp.eq.s32.totalorder %v1635_v47, 2 }
 0x1a1   : > { %v2461_v23 = vpop.eup %2460  ;;  %v1641_v53 = vxor.u32 2147483648, %v2459_v55  ;;  %v684_v29 = vor.u32 4788187, %v683_v37  ;;  %v931_v48 = vand.u32 31, %v929_v11  ;;  %vm1637_vm13 = vcmp.eq.s32.totalorder %v1635_v47, 0 }
 0x1a2   : > { %v1638_v44 = vxor.u32 2147483648, %v2461_v23  ;;  %v1498_v46 = vadd.s32 536870912, %v1497_v54  ;;  %v687_v43 = vcvt.s32.f32 %v680_v41  ;;  %vm1636_vm14 = vcmp.lt.s32.totalorder %v1635_v47, 2 }
 0x1a3   : > { %v1642_v5 = vsel %vm1640_vm12, %v1641_v53, %v2461_v23  ;;  %v685_v33 = vand.u32 2147483647, %v684_v29  ;;  %v932_v38 = vsub.s32 32, %v931_v48  ;;  %v3305_v36 = vand.u32 3, %v698_v8 }
 0x1a4   : > { %v1639_v30 = vsel %vm1637_vm13, %v2459_v55, %v1638_v44  ;;  %v3303_v63 = vshrl.u32 %v1498_v46, 30  ;;  %v925_v42 = vor.u32 8388608, %v924_v16  ;;  %v934_v24 = vshll.u32 %v2566_v60, %v931_v48 }
 0x1a5   : > { %v1643_v20 = vsel %vm1636_vm14, %v1639_v30, %v1642_v5  ;;  %v688_v40 = vmul.f32 %v687_v43, %v685_v33  ;;  %v3312_v58 = vadd.f32 %v3167_v34, %v2307_v35  ;;  %v935_v51 = vshrl.u32 %v2567_v0, %v932_v38 }
 0x1a6   : > { %v1644_v25 = vsel %vm1633_vm10, nan, %v1643_v20  ;;  %v1500_v49 = vshll.u32 %v3303_v63, 30  ;;  %v938_v31 = vshrl.u32 %v2568_v2, %v932_v38  ;;  %v941_v28 = vshrl.u32 %v2569_v4, %v932_v38 }
 0x1a7   : > { %2072 = vst [vmem:[%s3014_s4 + $0x58] sm:$0xff] %v1644_v25  ;;  %v689_v39 = vxor.u32 2147483648, %v688_v40  ;;  %v937_v26 = vshll.u32 %v2567_v0, %v931_v48  ;;  %v940_v56 = vshll.u32 %v2568_v2, %v931_v48  ;;  %v944_v3 = vshrl.u32 %v2570_v6, %v932_v38 }
 0x1a8   : > { %v3318_v15 = vsub.s32 %v1497_v54, %v1500_v49  ;;  %v930_v14 = vshrl.u32 %v929_v11, 5  ;;  %v936_v7 = vor.u32 %v935_v51, %v934_v24  ;;  %v943_v52 = vshll.u32 %v2569_v4, %v931_v48 }
 0x1a9   : > { %v690_v59 = vsel %vm607_vm2, %v689_v39, %v688_v40  ;;  %v939_v45 = vor.u32 %v938_v31, %v937_v26  ;;  %v942_v10 = vor.u32 %v941_v28, %v940_v56  ;;  %v946_v47 = vshll.u32 %v2570_v6, %v931_v48 }
 0x1aa   : > { %v693_v61 = vsel %vm3285_vm8, %v3098_v50, %v690_v59  ;;  %v1503_v9 = vsub.s32 0, %v3318_v15  ;;  %v945_v18 = vor.u32 %v944_v3, %v943_v52  ;;  %v947_v22 = vshrl.u32 %v2571_v13, %v932_v38 }
 0x1ab   : > { %2462 = vcosq.f32 %v693_v61  ;;  %v965_v41 = vshll.u32 %v925_v42, 8  ;;  %v1752_v37 = vand.u32 2139095040, %v3312_v58  ;;  %v933_v27 = vshrl.u32 %v2566_v60, %v932_v38 }
 0x1ac   : > { %2464 = vsinq.f32 %v693_v61  ;;  %v2218_v17 = vmin.u32 %v1503_v9, %v3318_v15  ;;  %v948_v19 = vor.u32 %v947_v22, %v946_v47  ;;  %vm949_vm15 = vcmp.lt.s32.totalorder %v930_v14, 1 }
 0x1ad   : > { %vm950_vm0 = vcmp.lt.s32.totalorder %v930_v14, 2  ;;  %vm951_vm1 = vcmp.lt.s32.totalorder %v930_v14, 3  ;;  %vm952_vm2 = vcmp.lt.s32.totalorder %v930_v14, 4  ;;  %v957_v54 = vsel %vm949_vm15, %v936_v7, %v939_v45 }
 0x1ae   : > { %v1505_v55 = vclz %v2218_v17  ;;  %v954_v11 = vsel %vm952_vm2, %v942_v10, 2102212464  ;;  %v958_v23 = vsel %vm952_vm2, %v945_v18, 920167782  ;;  %v961_v53 = vsel %vm949_vm15, %v939_v45, %v942_v10 }
 0x1af   : > { %v962_v29 = vsel %vm952_vm2, %v948_v19, 1326507024  ;;  %v1523_v16 = vsub.s32 4, %v3303_v63  ;;  %v959_v44 = vsel %vm951_vm1, %v942_v10, %v958_v23  ;;  %v953_v48 = vsel %vm949_vm15, %v933_v27, %v936_v7 }
 0x1b0   : > { %v2219_v8 = vadd.s32 4294967294, %v1505_v55  ;;  %v963_v46 = vsel %vm951_vm1, %v945_v18, %v962_v29  ;;  %v960_v5 = vsel %vm950_vm0, %v957_v54, %v959_v44  ;;  %v1753_v43 = vshrl.u32 %v1752_v37, 23 }
 0x1b1   : > { %v964_v33 = vsel %vm950_vm0, %v961_v53, %v963_v46  ;;  %v955_v35 = vsel %vm951_vm1, %v939_v45, %v954_v11  ;;  %v3344_v40 = vmul.u32.u64.low %v965_v41, %v960_v5  ;;  %v3345_v42 = vmul.u32.u64.high %v965_v41, %v960_v5, %v3344_v40 }
 0x1b2   : > { %vm2220_vm3 = vcmp.lt.s32.totalorder %v2219_v8, 0  ;;  %v3341_v30 = vmul.u32.u64.low %v965_v41, %v964_v33  ;;  %v3342_v38 = vmul.u32.u64.high %v965_v41, %v964_v33, %v3341_v30  ;;  %v2229_v25 = vadd.s32 4294967169, %v1753_v43 }
 0x1b3   : > { %v1508_v20 = vsel %vm2220_vm3, 0, %v2219_v8  ;;  %vm3350_vm4 = vcmp.le.f32.partialorder %v1437_v57, 0.7853982  ;;  %v1493_v24 = vadd.s32 %v3272_v32, %v3280_v12  ;;  %vm697_vm5 = vweird.f32 %v3098_v50 }
 0x1b4   : > { %v1509_v39 = vsub.s32 32, %v1508_v20  ;;  %v1513_v51 = vsub.s32 4294967266, %v1508_v20  ;;  %vm700_vm6 = vcmp.lt.s32.totalorder %v3305_v36, 2  ;;  %vm1439_vm7 = vcmp.lt.s32.totalorder %v3170_v62, 0 }
 0x1b5   : > { %v956_v31 = vsel %vm950_vm0, %v953_v48, %v955_v35  ;;  %v1759_v28 = vadd.s32 1, %v2229_v25  ;;  %v1510_v26 = vshll.u32 %v3318_v15, %v1508_v20  ;;  %vm974_vm8 = vc.u32 %v3342_v38, %v3344_v40  ;;  %v338_v15 = vpop.f32.mrf.mxu0 }
 0x1b6   : > { %v1511_v57 = vshrl.u32 %v1493_v24, %v1509_v39  ;;  %v1514_v56 = vadd.s32 127, %v1513_v51  ;;  %vm701_vm9 = vcmp.eq.s32.totalorder %v3305_v36, 0  ;;  %v1524_v32 = vsel %vm1439_vm7, %v1523_v16, %v3303_v63 }
 0x1b7   : > { %v975_v12 = vadd.s32 1, %v3345_v42  ;;  %vm1760_vm11 = vcmp.gt.s32.totalorder %v1759_v28, 0  ;;  %v972_v7 = vmul.u32 %v965_v41, %v956_v31  ;;  %v1749_v10 = vand.u32 2147483647, %v3312_v58 }
 0x1b8   : > { %v2463_v3 = vpop.eup %2462  ;;  %v1512_v59 = vor.u32 %v1511_v57, %v1510_v26  ;;  %v1515_v14 = vshll.u32 %v1514_v56, 23  ;;  %v1761_v52 = vsel %vm1760_vm11, %v1759_v28, 0  ;;  %vm704_vm10 = vcmp.eq.s32.totalorder %v3305_v36, 2 }
 0x1b9   : > { %v2465_v61 = vpop.eup %2464  ;;  %v705_v9 = vxor.u32 2147483648, %v2463_v3  ;;  %v976_v45 = vsel %vm974_vm8, %v975_v12, %v3345_v42  ;;  %v1763_v18 = vand.u32 31, %v1761_v52  ;;  %v1526_v37 = vsel %vm3350_vm4, 0, %v1524_v32 }
 0x1ba   : > { %v702_v47 = vxor.u32 2147483648, %v2465_v61  ;;  %v1516_v63 = vor.u32 4788187, %v1515_v14  ;;  %v977_v22 = vadd.s32 %v976_v45, %v972_v7  ;;  %v3374_v27 = vadd.f32 %v3167_v34, %v338_v15 }
 0x1bb   : > { %v706_v17 = vsel %vm704_vm10, %v705_v9, %v2465_v61  ;;  %v1764_v41 = vsub.s32 32, %v1763_v18  ;;  %v1519_v54 = vcvt.s32.f32 %v1512_v59  ;;  %v1756_v53 = vand.u32 8388607, %v1749_v10 }
 0x1bc   : > { %v703_v19 = vsel %vm701_vm9, %v2463_v3, %v702_v47  ;;  %v1517_v55 = vand.u32 2147483647, %v1516_v63  ;;  %v978_v11 = vadd.s32 536870912, %v977_v22  ;;  %v1762_v5 = vshrl.u32 %v1761_v52, 5 }
 0x1bd   : > { %v707_v23 = vsel %vm700_vm6, %v703_v19, %v706_v17  ;;  %v1767_v29 = vshrl.u32 %v2567_v0, %v1764_v41  ;;  %v1770_v8 = vshrl.u32 %v2568_v2, %v1764_v41  ;;  %v1773_v48 = vshrl.u32 %v2569_v4, %v1764_v41 }
 0x1be   : > { %v708_v16 = vsel %vm697_vm5, nan, %v707_v23  ;;  %v1520_v44 = vmul.f32 %v1519_v54, %v1517_v55  ;;  %v979_v46 = vshrl.u32 %v978_v11, 30  ;;  %v1766_v33 = vshll.u32 %v2566_v60, %v1763_v18 }
 0x1bf   : > { %2063 = vst [vmem:[%s3014_s4 + $0x10] sm:$0xff] %v708_v16  ;;  %v1772_v36 = vshll.u32 %v2568_v2, %v1763_v18  ;;  %v1776_v43 = vshrl.u32 %v2570_v6, %v1764_v41  ;;  %v1769_v20 = vshll.u32 %v2567_v0, %v1763_v18  ;;  %v1775_v42 = vshll.u32 %v2569_v4, %v1763_v18 }
 0x1c0   : > { %v1521_v35 = vxor.u32 2147483648, %v1520_v44  ;;  %v980_v30 = vshll.u32 %v979_v46, 30  ;;  %v1768_v50 = vor.u32 %v1767_v29, %v1766_v33  ;;  %v1778_v24 = vshll.u32 %v2570_v6, %v1763_v18 }
 0x1c1   : > { %v1774_v25 = vor.u32 %v1773_v48, %v1772_v36  ;;  %v1779_v39 = vshrl.u32 %v2571_v13, %v1764_v41  ;;  %v1771_v28 = vor.u32 %v1770_v8, %v1769_v20  ;;  %v1777_v26 = vor.u32 %v1776_v43, %v1775_v42 }
 0x1c2   : > { %v1522_v51 = vsel %vm1439_vm7, %v1521_v35, %v1520_v44  ;;  %v3397_v31 = vsub.s32 %v977_v22, %v980_v30  ;;  %v1530_v56 = vadd.s32 3, %v1526_v37  ;;  %v1757_v32 = vor.u32 8388608, %v1756_v53 }
 0x1c3   : > { %v1525_v57 = vsel %vm3350_vm4, %v3170_v62, %v1522_v51  ;;  %v1780_v12 = vor.u32 %v1779_v39, %v1778_v24  ;;  %vm1784_vm12 = vcmp.lt.s32.totalorder %v1762_v5, 4  ;;  %v816_v59 = vand.u32 2139095040, %v3374_v27 }
 0x1c4   : > { %2466 = vcosq.f32 %v1525_v57  ;;  %v983_v3 = vsub.s32 0, %v3397_v31  ;;  %v1765_v14 = vshrl.u32 %v2566_v60, %v1764_v41  ;;  %vm1781_vm13 = vcmp.lt.s32.totalorder %v1762_v5, 1 }
 0x1c5   : > { %2468 = vsinq.f32 %v1525_v57  ;;  %v1786_v7 = vsel %vm1784_vm12, %v1774_v25, 2102212464  ;;  %vm1783_vm14 = vcmp.lt.s32.totalorder %v1762_v5, 3  ;;  %v1789_v15 = vsel %vm1781_vm13, %v1768_v50, %v1771_v28 }
 0x1c6   : > { %v2198_v52 = vmin.u32 %v983_v3, %v3397_v31  ;;  %v1790_v49 = vsel %vm1784_vm12, %v1777_v26, 920167782  ;;  %v1003_v61 = vsub.s32 4, %v979_v46  ;;  %v1793_v45 = vsel %vm1781_vm13, %v1771_v28, %v1774_v25 }
 0x1c7   : > { %v1791_v9 = vsel %vm1783_vm14, %v1774_v25, %v1790_v49  ;;  %v1794_v18 = vsel %vm1784_vm12, %v1780_v12, 1326507024  ;;  %vm1782_vm15 = vcmp.lt.s32.totalorder %v1762_v5, 2  ;;  %v1785_v63 = vsel %vm1781_vm13, %v1765_v14, %v1768_v50 }
 0x1c8   : > { %v985_v47 = vclz %v2198_v52  ;;  %v1787_v22 = vsel %vm1783_vm14, %v1771_v28, %v1786_v7  ;;  %v1792_v17 = vsel %vm1782_vm15, %v1789_v15, %v1791_v9  ;;  %v1795_v37 = vsel %vm1783_vm14, %v1777_v26, %v1794_v18  ;;  %v378_v18 = vpop.f32.mrf.mxu1 }
 0x1c9   : > { %v1797_v19 = vshll.u32 %v1757_v32, 8  ;;  %v817_v55 = vshrl.u32 %v816_v59, 23  ;;  %vm919_vm0 = vcmp.lt.s32.totalorder %v3240_v1, 0  ;;  %v1796_v54 = vsel %vm1782_vm15, %v1793_v45, %v1795_v37 }
 0x1ca   : > { %v2199_v41 = vadd.s32 4294967294, %v985_v47  ;;  %v1004_v8 = vsel %vm919_vm0, %v1003_v61, %v979_v46  ;;  %v1788_v16 = vsel %vm1782_vm15, %v1785_v63, %v1787_v22  ;;  %v1531_v48 = vand.u32 3, %v1530_v56 }
 0x1cb   : > { %v3407_v11 = vmul.u32.u64.low %v1797_v19, %v1796_v54  ;;  %v3408_v23 = vmul.u32.u64.high %v1797_v19, %v1796_v54, %v3407_v11  ;;  %v3410_v53 = vmul.u32.u64.low %v1797_v19, %v1792_v17  ;;  %v3411_v29 = vmul.u32.u64.high %v1797_v19, %v1792_v17, %v3410_v53 }
 0x1cc   : > { %vm2200_vm1 = vcmp.lt.s32.totalorder %v2199_v41, 0  ;;  %v2193_v44 = vadd.s32 4294967169, %v817_v55  ;;  %vm3418_vm2 = vcmp.le.f32.partialorder %v917_v21, 0.7853982  ;;  %v813_v36 = vand.u32 2147483647, %v3374_v27 }
 0x1cd   : > { %v988_v33 = vsel %vm2200_vm1, 0, %v2199_v41  ;;  %v973_v43 = vadd.s32 %v3344_v40, %v3342_v38  ;;  %v1006_v46 = vsel %vm3418_vm2, 0, %v1004_v8  ;;  %v1804_v42 = vmul.u32 %v1797_v19, %v1788_v16 }
 0x1ce   : > { %v989_v35 = vsub.s32 32, %v988_v33  ;;  %v993_v30 = vsub.s32 4294967266, %v988_v33  ;;  %v823_v20 = vadd.s32 1, %v2193_v44  ;;  %vm1806_vm3 = vc.u32 %v3408_v23, %v3410_v53 }
 0x1cf   : > { %v1807_v21 = vadd.s32 1, %v3411_v29  ;;  %v990_v50 = vshll.u32 %v3397_v31, %v988_v33  ;;  %vm1536_vm5 = vcmp.eq.s32.totalorder %v1531_v48, 2  ;;  %v1010_v12 = vadd.s32 3, %v1006_v46 }
 0x1d0   : > { %v991_v25 = vshrl.u32 %v973_v43, %v989_v35  ;;  %v994_v24 = vadd.s32 127, %v993_v30  ;;  %vm824_vm4 = vcmp.gt.s32.totalorder %v823_v20, 0  ;;  %v820_v3 = vand.u32 8388607, %v813_v36 }
 0x1d1   : > { %v2467_v39 = vpop.eup %2466  ;;  %v1808_v38 = vsel %vm1806_vm3, %v1807_v21, %v3411_v29  ;;  %v825_v40 = vsel %vm824_vm4, %v823_v20, 0  ;;  %vm1533_vm6 = vcmp.eq.s32.totalorder %v1531_v48, 0  ;;  %vm1529_vm7 = vweird.f32 %v3170_v62 }
 0x1d2   : > { %v2469_v51 = vpop.eup %2468  ;;  %v1537_v28 = vxor.u32 2147483648, %v2467_v39  ;;  %v992_v26 = vor.u32 %v991_v25, %v990_v50  ;;  %v995_v57 = vshll.u32 %v994_v24, 23  ;;  %v1809_v56 = vadd.s32 %v1808_v38, %v1804_v42 }
 0x1d3   : > { %v1534_v32 = vxor.u32 2147483648, %v2469_v51  ;;  %v827_v59 = vand.u32 31, %v825_v40  ;;  %vm1532_vm8 = vcmp.lt.s32.totalorder %v1531_v48, 2  ;;  %v3437_v63 = vand.u32 3, %v1010_v12 }
 0x1d4   : > { %v1538_v31 = vsel %vm1536_vm5, %v1537_v28, %v2469_v51  ;;  %v996_v14 = vor.u32 4788187, %v995_v57  ;;  %v1810_v7 = vadd.s32 536870912, %v1809_v56  ;;  %v999_v9 = vcvt.s32.f32 %v992_v26 }
 0x1d5   : > { %v1535_v52 = vsel %vm1533_vm6, %v2467_v39, %v1534_v32  ;;  %v828_v15 = vsub.s32 32, %v827_v59  ;;  %v821_v22 = vor.u32 8388608, %v820_v3  ;;  %v826_v55 = vshrl.u32 %v825_v40, 5 }
 0x1d6   : > { %v1539_v49 = vsel %vm1532_vm8, %v1535_v52, %v1538_v31  ;;  %v997_v61 = vand.u32 2147483647, %v996_v14  ;;  %v3435_v45 = vshrl.u32 %v1810_v7, 30  ;;  %v3446_v11 = vadd.f32 %v3167_v34, %v378_v18 }
 0x1d7   : > { %v1540_v47 = vsel %vm1529_vm7, nan, %v1539_v49  ;;  %v831_v19 = vshrl.u32 %v2567_v0, %v828_v15  ;;  %v834_v62 = vshrl.u32 %v2568_v2, %v828_v15  ;;  %v837_v41 = vshrl.u32 %v2569_v4, %v828_v15 }
 0x1d8   : > { %2071 = vst [vmem:[%s3014_s4 + $0x50] sm:$0xff] %v1540_v47  ;;  %v1000_v17 = vmul.f32 %v999_v9, %v997_v61  ;;  %v1812_v37 = vshll.u32 %v3435_v45, 30  ;;  %v840_v54 = vshrl.u32 %v2570_v6, %v828_v15  ;;  %v830_v16 = vshll.u32 %v2566_v60, %v827_v59 }
 0x1d9   : > { %v833_v44 = vshll.u32 %v2567_v0, %v827_v59  ;;  %v836_v48 = vshll.u32 %v2568_v2, %v827_v59  ;;  %v839_v33 = vshll.u32 %v2569_v4, %v827_v59  ;;  %v842_v43 = vshll.u32 %v2570_v6, %v827_v59 }
 0x1da   : > { %v1001_v29 = vxor.u32 2147483648, %v1000_v17  ;;  %v3448_v8 = vsub.s32 %v1809_v56, %v1812_v37  ;;  %v843_v35 = vshrl.u32 %v2571_v13, %v828_v15  ;;  %v832_v20 = vor.u32 %v831_v19, %v830_v16 }
 0x1db   : > { %v835_v46 = vor.u32 %v834_v62, %v833_v44  ;;  %vm1751_vm9 = vcmp.lt.s32.totalorder %v3312_v58, 0  ;;  %v838_v21 = vor.u32 %v837_v41, %v836_v48  ;;  %v841_v50 = vor.u32 %v840_v54, %v839_v33 }
 0x1dc   : > { %v1002_v30 = vsel %vm919_vm0, %v1001_v29, %v1000_v17  ;;  %v1815_v34 = vsub.s32 0, %v3448_v8  ;;  %v844_v25 = vor.u32 %v843_v35, %v842_v43  ;;  %v861_v39 = vshll.u32 %v821_v22, 8 }
 0x1dd   : > { %v1005_v42 = vsel %vm3418_vm2, %v3240_v1, %v1002_v30  ;;  %v1648_v38 = vand.u32 2139095040, %v3446_v11  ;;  %v1835_v40 = vsub.s32 4, %v3435_v45  ;;  %v829_v51 = vshrl.u32 %v2566_v60, %v828_v15 }
 0x1de   : > { %2470 = vcosq.f32 %v1005_v42  ;;  %v2230_v24 = vmin.u32 %v1815_v34, %v3448_v8  ;;  %vm845_vm11 = vcmp.lt.s32.totalorder %v826_v55, 1  ;;  %vm847_vm10 = vcmp.lt.s32.totalorder %v826_v55, 3 }
 0x1df   : > { %2472 = vsinq.f32 %v1005_v42  ;;  %vm848_vm12 = vcmp.lt.s32.totalorder %v826_v55, 4  ;;  %v853_v5 = vsel %vm845_vm11, %v832_v20, %v835_v46  ;;  %v857_v56 = vsel %vm845_vm11, %v835_v46, %v838_v21 }
 0x1e0   : > { %v1817_v28 = vclz %v2230_v24  ;;  %v850_v26 = vsel %vm848_vm12, %v838_v21, 2102212464  ;;  %v854_v57 = vsel %vm848_vm12, %v841_v50, 920167782  ;;  %v858_v32 = vsel %vm848_vm12, %v844_v25, 1326507024 }
 0x1e1   : > { %vm846_vm13 = vcmp.lt.s32.totalorder %v826_v55, 2  ;;  %v855_v3 = vsel %vm847_vm10, %v838_v21, %v854_v57  ;;  %v859_v59 = vsel %vm847_vm10, %v841_v50, %v858_v32  ;;  %v849_v31 = vsel %vm845_vm11, %v829_v51, %v832_v20  ;;  %v2298_v55 = vpop.f32.mrf.mxu0  ;;  %v3506_v50 = vld [vmem:[%s3902_s2] ss:$0 sm:$0xff] }
 0x1e2   : > { %v2231_v12 = vadd.s32 4294967294, %v1817_v28  ;;  %v856_v14 = vsel %vm846_vm13, %v853_v5, %v855_v3  ;;  %v860_v7 = vsel %vm846_vm13, %v857_v56, %v859_v59  ;;  %v1649_v52 = vshrl.u32 %v1648_v38, 23 }
 0x1e3   : > { %v851_v15 = vsel %vm847_vm10, %v835_v46, %v850_v26  ;;  %v3472_v49 = vmul.u32.u64.low %v861_v39, %v860_v7  ;;  %v3473_v61 = vmul.u32.u64.high %v861_v39, %v860_v7, %v3472_v49  ;;  %v1805_v17 = vadd.s32 %v3410_v53, %v3408_v23 }
 0x1e4   : > { %vm2232_vm14 = vcmp.lt.s32.totalorder %v2231_v12, 0  ;;  %v3475_v18 = vmul.u32.u64.low %v861_v39, %v856_v14  ;;  %v3476_v47 = vmul.u32.u64.high %v861_v39, %v856_v14, %v3475_v18  ;;  %v2225_v22 = vadd.s32 4294967169, %v1649_v52 }
 0x1e5   : > { %v1820_v9 = vsel %vm2232_vm14, 0, %v2231_v12  ;;  %v1836_v62 = vsel %vm1751_vm9, %v1835_v40, %v3435_v45  ;;  %vm1012_vm15 = vcmp.lt.s32.totalorder %v3437_v63, 2  ;;  %vm3487_vm0 = vcmp.le.f32.partialorder %v1749_v10, 0.7853982 }
 0x1e6   : > { %v1821_v37 = vsub.s32 32, %v1820_v9  ;;  %v1825_v19 = vsub.s32 4294967266, %v1820_v9  ;;  %v852_v54 = vsel %vm846_vm13, %v849_v31, %v851_v15  ;;  %v1655_v29 = vadd.s32 1, %v2225_v22 }
 0x1e7   : > { %vm1009_vm1 = vweird.f32 %v3240_v1  ;;  %v1822_v23 = vshll.u32 %v3448_v8, %v1820_v9  ;;  %vm870_vm2 = vc.u32 %v3473_v61, %v3475_v18  ;;  %v1838_v45 = vsel %vm3487_vm0, 0, %v1836_v62 }
 0x1e8   : > { %v1823_v53 = vshrl.u32 %v1805_v17, %v1821_v37  ;;  %v1826_v16 = vadd.s32 127, %v1825_v19  ;;  %v871_v10 = vadd.s32 1, %v3476_v47  ;;  %v1645_v44 = vand.u32 2147483647, %v3446_v11 }
 0x1e9   : > { %vm1656_vm3 = vcmp.gt.s32.totalorder %v1655_v29, 0  ;;  %v868_v43 = vmul.u32 %v861_v39, %v852_v54  ;;  %vm1013_vm4 = vcmp.eq.s32.totalorder %v3437_v63, 0  ;;  %vm1016_vm5 = vcmp.eq.s32.totalorder %v3437_v63, 2 }
 0x1ea   : > { %v1824_v48 = vor.u32 %v1823_v53, %v1822_v23  ;;  %v1827_v33 = vshll.u32 %v1826_v16, 23  ;;  %v1657_v35 = vsel %vm1656_vm3, %v1655_v29, 0  ;;  %v872_v8 = vsel %vm870_vm2, %v871_v10, %v3476_v47 }
 0x1eb   : > { %v2471_v30 = vpop.eup %2470  ;;  %v1659_v34 = vand.u32 31, %v1657_v35  ;;  %v873_v21 = vadd.s32 %v872_v8, %v868_v43  ;;  %v3509_v25 = vadd.f32 %v3506_v50, %v2298_v55  ;;  %v3511_v39 = vadd.s32 3, %v1838_v45 }
 0x1ec   : > { %v2473_v20 = vpop.eup %2472  ;;  %v1017_v46 = vxor.u32 2147483648, %v2471_v30  ;;  %v1828_v42 = vor.u32 4788187, %v1827_v33  ;;  %v1652_v38 = vand.u32 8388607, %v1645_v44  ;;  %v1831_v5 = vcvt.s32.f32 %v1824_v48 }
 0x1ed   : > { %v1014_v24 = vxor.u32 2147483648, %v2473_v20  ;;  %v1660_v40 = vsub.s32 32, %v1659_v34  ;;  %v874_v26 = vadd.s32 536870912, %v873_v21  ;;  %v1662_v56 = vshll.u32 %v2566_v60, %v1659_v34 }
 0x1ee   : > { %v1018_v51 = vsel %vm1016_vm5, %v1017_v46, %v2473_v20  ;;  %v1829_v28 = vand.u32 2147483647, %v1828_v42  ;;  %v1653_v52 = vor.u32 8388608, %v1652_v38  ;;  %v1658_v15 = vshrl.u32 %v1657_v35, 5 }
 0x1ef   : > { %v1015_v57 = vsel %vm1013_vm4, %v2471_v30, %v1014_v24  ;;  %v1663_v32 = vshrl.u32 %v2567_v0, %v1660_v40  ;;  %v1666_v12 = vshrl.u32 %v2568_v2, %v1660_v40  ;;  %v3522_v31 = vshrl.u32 %v874_v26, 30 }
 0x1f0   : > { %v1019_v3 = vsel %vm1012_vm15, %v1015_v57, %v1018_v51  ;;  %v1832_v59 = vmul.f32 %v1831_v5, %v1829_v28  ;;  %v1669_v14 = vshrl.u32 %v2569_v4, %v1660_v40  ;;  %v1665_v49 = vshll.u32 %v2567_v0, %v1659_v34  ;;  %v2310_v5 = vpop.f32.mrf.mxu1 }
 0x1f1   : > { %v1020_v7 = vsel %vm1009_vm1, nan, %v1019_v3  ;;  %v876_v47 = vshll.u32 %v3522_v31, 30  ;;  %v1664_v22 = vor.u32 %v1663_v32, %v1662_v56  ;;  %v1668_v63 = vshll.u32 %v2568_v2, %v1659_v34 }
 0x1f2   : > { %2066 = vst [vmem:[%s3014_s4 + $0x28] sm:$0xff] %v1020_v7  ;;  %v1833_v9 = vxor.u32 2147483648, %v1832_v59  ;;  %v1671_v17 = vshll.u32 %v2569_v4, %v1659_v34  ;;  %v1672_v37 = vshrl.u32 %v2570_v6, %v1660_v40  ;;  %v1674_v19 = vshll.u32 %v2570_v6, %v1659_v34 }
 0x1f3   : > { %v1675_v1 = vshrl.u32 %v2571_v13, %v1660_v40  ;;  %v3537_v54 = vsub.s32 %v873_v21, %v876_v47  ;;  %v1667_v29 = vor.u32 %v1666_v12, %v1665_v49  ;;  %v1670_v23 = vor.u32 %v1669_v14, %v1668_v63 }
 0x1f4   : > { %v1834_v62 = vsel %vm1751_vm9, %v1833_v9, %v1832_v59  ;;  %v1673_v16 = vor.u32 %v1672_v37, %v1671_v17  ;;  %v1125_v10 = vand.u32 2147483647, %v3509_v25  ;;  %v1661_v48 = vshrl.u32 %v2566_v60, %v1660_v40 }
 0x1f5   : > { %v1837_v53 = vsel %vm3487_vm0, %v3312_v58, %v1834_v62  ;;  %v1676_v45 = vor.u32 %v1675_v1, %v1674_v19  ;;  %v879_v55 = vsub.s32 0, %v3537_v54  ;;  %v1128_v33 = vand.u32 2139095040, %v3509_v25 }
 0x1f6   : > { %2474 = vcosq.f32 %v1837_v53  ;;  %vm815_vm6 = vcmp.lt.s32.totalorder %v3374_v27, 0  ;;  %vm1677_vm7 = vcmp.lt.s32.totalorder %v1658_v15, 1  ;;  %vm1679_vm8 = vcmp.lt.s32.totalorder %v1658_v15, 3 }
 0x1f7   : > { %2476 = vsinq.f32 %v1837_v53  ;;  %vm1680_vm9 = vcmp.lt.s32.totalorder %v1658_v15, 4  ;;  %v2194_v41 = vmin.u32 %v879_v55, %v3537_v54  ;;  %v1685_v35 = vsel %vm1677_vm7, %v1664_v22, %v1667_v29 }
 0x1f8   : > { %v1682_v43 = vsel %vm1680_vm9, %v1670_v23, 2102212464  ;;  %v1686_v30 = vsel %vm1680_vm9, %v1673_v16, 920167782  ;;  %v1689_v34 = vsel %vm1677_vm7, %v1667_v29, %v1670_v23  ;;  %v1690_v20 = vsel %vm1680_vm9, %v1676_v45, 1326507024 }
 0x1f9   : > { %v1687_v8 = vsel %vm1679_vm8, %v1670_v23, %v1686_v30  ;;  %v1693_v46 = vshll.u32 %v1653_v52, 8  ;;  %v881_v42 = vclz %v2194_v41  ;;  %v899_v21 = vsub.s32 4, %v3522_v31 }
 0x1fa   : > { %vm1678_vm11 = vcmp.lt.s32.totalorder %v1658_v15, 2  ;;  %v1681_v24 = vsel %vm1677_vm7, %v1661_v48, %v1664_v22  ;;  %v1683_v38 = vsel %vm1679_vm8, %v1667_v29, %v1682_v43  ;;  %v1691_v51 = vsel %vm1679_vm8, %v1673_v16, %v1690_v20 }
 0x1fb   : > { %v1688_v40 = vsel %vm1678_vm11, %v1685_v35, %v1687_v8  ;;  %v1129_v28 = vshrl.u32 %v1128_v33, 23  ;;  %v2195_v26 = vadd.s32 4294967294, %v881_v42  ;;  %v1692_v57 = vsel %vm1678_vm11, %v1689_v34, %v1691_v51 }
 0x1fc   : > { %v3552_v56 = vmul.u32.u64.low %v1693_v46, %v1688_v40  ;;  %v3553_v32 = vmul.u32.u64.high %v1693_v46, %v1688_v40, %v3552_v56  ;;  %vm3557_vm10 = vcmp.le.f32.partialorder %v813_v36, 0.7853982  ;;  %v1843_v7 = vand.u32 3, %v3511_v39 }
 0x1fd   : > { %v3561_v3 = vmul.u32.u64.low %v1693_v46, %v1692_v57  ;;  %v3562_v59 = vmul.u32.u64.high %v1693_v46, %v1692_v57, %v3561_v3  ;;  %v2205_v14 = vadd.s32 4294967169, %v1129_v28  ;;  %vm2196_vm12 = vcmp.lt.s32.totalorder %v2195_v26, 0 }
 0x1fe   : > { %v1684_v52 = vsel %vm1678_vm11, %v1681_v24, %v1683_v38  ;;  %v3566_v15 = vadd.f32 %v3506_v50, %v2310_v5  ;;  %v869_v49 = vadd.s32 %v3475_v18, %v3473_v61  ;;  %v884_v9 = vsel %vm2196_vm12, 0, %v2195_v26 }
 0x1ff   : > { %v3572_v36 = vand.u32 8388607, %v1125_v10  ;;  %v1135_v47 = vadd.s32 1, %v2205_v14  ;;  %vm1841_vm13 = vweird.f32 %v3312_v58  ;;  %v885_v22 = vsub.s32 32, %v884_v9 }
 0x200   : > { %v889_v63 = vsub.s32 4294967266, %v884_v9  ;;  %v900_v39 = vsel %vm815_vm6, %v899_v21, %v3522_v31  ;;  %v1703_v17 = vadd.s32 1, %v3553_v32  ;;  %v886_v37 = vshll.u32 %v3537_v54, %v884_v9 }
 0x201   : > { %v1700_v19 = vmul.u32 %v1693_v46, %v1684_v52  ;;  %vm1702_vm14 = vc.u32 %v3562_v59, %v3552_v56  ;;  %vm1136_vm15 = vcmp.gt.s32.totalorder %v1135_v47, 0  ;;  %v887_v61 = vshrl.u32 %v869_v49, %v885_v22 }
 0x202   : > { %v890_v18 = vadd.s32 127, %v889_v63  ;;  %v1704_v1 = vsel %vm1702_vm14, %v1703_v17, %v3553_v32  ;;  %v1137_v62 = vsel %vm1136_vm15, %v1135_v47, 0  ;;  %vm1844_vm0 = vcmp.lt.s32.totalorder %v1843_v7, 2 }
 0x203   : > { %v2475_v29 = vpop.eup %2474  ;;  %v902_v23 = vsel %vm3557_vm10, 0, %v900_v39  ;;  %v1705_v53 = vadd.s32 %v1704_v1, %v1700_v19  ;;  %v1139_v31 = vand.u32 31, %v1137_v62  ;;  %vm1845_vm1 = vcmp.eq.s32.totalorder %v1843_v7, 0 }
 0x204   : > { %v2477_v16 = vpop.eup %2476  ;;  %v1849_v45 = vxor.u32 2147483648, %v2475_v29  ;;  %v888_v54 = vor.u32 %v887_v61, %v886_v37  ;;  %v891_v55 = vshll.u32 %v890_v18, 23  ;;  %vm1848_vm2 = vcmp.eq.s32.totalorder %v1843_v7, 2 }
 0x205   : > { %v1846_v48 = vxor.u32 2147483648, %v2477_v16  ;;  %v1706_v33 = vadd.s32 536870912, %v1705_v53  ;;  %v1140_v41 = vsub.s32 32, %v1139_v31  ;;  %v3584_v30 = vadd.s32 3, %v902_v23 }
 0x206   : > { %v1850_v43 = vsel %vm1848_vm2, %v1849_v45, %v2477_v16  ;;  %v892_v35 = vor.u32 4788187, %v891_v55  ;;  %v1133_v8 = vor.u32 8388608, %v3572_v36  ;;  %v1957_v46 = vand.u32 2147483647, %v3566_v15 }
 0x207   : > { %v1847_v34 = vsel %vm1845_vm1, %v2475_v29, %v1846_v48  ;;  %v1707_v20 = vshrl.u32 %v1706_v33, 30  ;;  %v1960_v42 = vand.u32 2139095040, %v3566_v15  ;;  %v895_v38 = vcvt.s32.f32 %v888_v54 }
 0x208   : > { %v1851_v21 = vsel %vm1844_vm0, %v1847_v34, %v1850_v43  ;;  %v893_v24 = vand.u32 2147483647, %v892_v35  ;;  %v1143_v40 = vshrl.u32 %v2567_v0, %v1140_v41  ;;  %v3594_v28 = vadd.s32 %v3552_v56, %v3562_v59 }
 0x209   : > { %v1852_v51 = vsel %vm1841_vm13, nan, %v1851_v21  ;;  %v1708_v5 = vshll.u32 %v1707_v20, 30  ;;  %v1146_v26 = vshrl.u32 %v2568_v2, %v1140_v41  ;;  %v1138_v32 = vshrl.u32 %v1137_v62, 5 }
 0x20a   : > { %2074 = vst [vmem:[%s3014_s4 + $0x68] sm:$0xff] %v1852_v51  ;;  %v896_v57 = vmul.f32 %v895_v38, %v893_v24  ;;  %v1142_v3 = vshll.u32 %v2566_v60, %v1139_v31  ;;  %v1149_v14 = vshrl.u32 %v2569_v4, %v1140_v41  ;;  %v1145_v52 = vshll.u32 %v2567_v0, %v1139_v31 }
 0x20b   : > { %v3600_v7 = vsub.s32 %v1705_v53, %v1708_v5  ;;  %v1148_v58 = vshll.u32 %v2568_v2, %v1139_v31  ;;  %v1152_v49 = vshrl.u32 %v2570_v6, %v1140_v41  ;;  %v1151_v9 = vshll.u32 %v2569_v4, %v1139_v31 }
 0x20c   : > { %v897_v56 = vxor.u32 2147483648, %v896_v57  ;;  %v1144_v59 = vor.u32 %v1143_v40, %v1142_v3  ;;  %v1155_v36 = vshrl.u32 %v2571_v13, %v1140_v41  ;;  %vm1647_vm3 = vcmp.lt.s32.totalorder %v3446_v11, 0 }
 0x20d   : > { %v1711_v47 = vsub.s32 0, %v3600_v7  ;;  %v1147_v22 = vor.u32 %v1146_v26, %v1145_v52  ;;  %v1150_v63 = vor.u32 %v1149_v14, %v1148_v58  ;;  %v1154_v39 = vshll.u32 %v2570_v6, %v1139_v31 }
 0x20e   : > { %v898_v17 = vsel %vm815_vm6, %v897_v56, %v896_v57  ;;  %v1153_v37 = vor.u32 %v1152_v49, %v1151_v9  ;;  %v1173_v19 = vshll.u32 %v1133_v8, 8  ;;  %v1961_v61 = vshrl.u32 %v1960_v42, 23 }
 0x20f   : > { %v901_v18 = vsel %vm3557_vm10, %v3374_v27, %v898_v17  ;;  %v2226_v1 = vmin.u32 %v1711_v47, %v3600_v7  ;;  %v1141_v62 = vshrl.u32 %v2566_v60, %v1140_v41  ;;  %v1156_v29 = vor.u32 %v1155_v36, %v1154_v39 }
 0x210   : > { %2478 = vcosq.f32 %v901_v18  ;;  %v1731_v23 = vsub.s32 4, %v1707_v20  ;;  %vm1157_vm4 = vcmp.lt.s32.totalorder %v1138_v32, 1  ;;  %vm1160_vm5 = vcmp.lt.s32.totalorder %v1138_v32, 4 }
 0x211   : > { %2480 = vsinq.f32 %v901_v18  ;;  %v1713_v53 = vclz %v2226_v1  ;;  %v1162_v31 = vsel %vm1160_vm5, %v1150_v63, 2102212464  ;;  %v1165_v16 = vsel %vm1157_vm4, %v1144_v59, %v1147_v22 }
 0x212   : > { %vm1158_vm6 = vcmp.lt.s32.totalorder %v1138_v32, 2  ;;  %vm1159_vm7 = vcmp.lt.s32.totalorder %v1138_v32, 3  ;;  %v1166_v45 = vsel %vm1160_vm5, %v1153_v37, 920167782  ;;  %v1169_v54 = vsel %vm1157_vm4, %v1147_v22, %v1150_v63 }
 0x213   : > { %v2227_v55 = vadd.s32 4294967294, %v1713_v53  ;;  %v1161_v12 = vsel %vm1157_vm4, %v1141_v62, %v1144_v59  ;;  %v1167_v48 = vsel %vm1159_vm7, %v1150_v63, %v1166_v45  ;;  %v1170_v33 = vsel %vm1160_vm5, %v1156_v29, 1326507024 }
 0x214   : > { %v1163_v43 = vsel %vm1159_vm7, %v1147_v22, %v1162_v31  ;;  %v1168_v41 = vsel %vm1158_vm6, %v1165_v16, %v1167_v48  ;;  %v1171_v35 = vsel %vm1159_vm7, %v1153_v37, %v1170_v33  ;;  %v2237_v8 = vadd.s32 4294967169, %v1961_v61 }
 0x215   : > { %vm2228_vm8 = vcmp.lt.s32.totalorder %v2227_v55, 0  ;;  %v1172_v34 = vsel %vm1158_vm6, %v1169_v54, %v1171_v35  ;;  %v3619_v42 = vmul.u32.u64.low %v1173_v19, %v1168_v41  ;;  %v3620_v21 = vmul.u32.u64.high %v1173_v19, %v1168_v41, %v3619_v42 }
 0x216   : > { %v1716_v24 = vsel %vm2228_vm8, 0, %v2227_v55  ;;  %v1732_v38 = vsel %vm1647_vm3, %v1731_v23, %v1707_v20  ;;  %v3625_v40 = vmul.u32.u64.low %v1173_v19, %v1172_v34  ;;  %v3626_v51 = vmul.u32.u64.high %v1173_v19, %v1172_v34, %v3625_v40 }
 0x217   : > { %v1717_v5 = vsub.s32 32, %v1716_v24  ;;  %v1721_v26 = vsub.s32 4294967266, %v1716_v24  ;;  %v1164_v57 = vsel %vm1158_vm6, %v1161_v12, %v1163_v43  ;;  %v1967_v3 = vadd.s32 1, %v2237_v8 }
 0x218   : > { %v907_v14 = vand.u32 3, %v3584_v30  ;;  %vm3632_vm9 = vcmp.le.f32.partialorder %v1645_v44, 0.7853982  ;;  %v1718_v58 = vshll.u32 %v3600_v7, %v1716_v24  ;;  %v1183_v56 = vadd.s32 1, %v3620_v21 }
 0x219   : > { %v1719_v20 = vshrl.u32 %v3594_v28, %v1717_v5  ;;  %v1722_v49 = vadd.s32 127, %v1721_v26  ;;  %vm1968_vm11 = vcmp.gt.s32.totalorder %v1967_v3, 0  ;;  %v1734_v32 = vsel %vm3632_vm9, 0, %v1732_v38  ;;  %v348_v26 = vpop.f32.mrf.mxu0 }
 0x21a   : > { %v1180_v59 = vmul.u32 %v1173_v19, %v1164_v57  ;;  %vm1182_vm10 = vc.u32 %v3626_v51, %v3619_v42  ;;  %v1969_v30 = vsel %vm1968_vm11, %v1967_v3, 0  ;;  %v1964_v7 = vand.u32 8388607, %v1957_v46 }
 0x21b   : > { %v1720_v44 = vor.u32 %v1719_v20, %v1718_v58  ;;  %v1723_v9 = vshll.u32 %v1722_v49, 23  ;;  %v1184_v36 = vsel %vm1182_vm10, %v1183_v56, %v3620_v21  ;;  %vm905_vm12 = vweird.f32 %v3374_v27 }
 0x21c   : > { %v1185_v28 = vadd.s32 %v1184_v36, %v1180_v59  ;;  %v1971_v47 = vand.u32 31, %v1969_v30  ;;  %vm908_vm13 = vcmp.lt.s32.totalorder %v907_v14, 2  ;;  %vm909_vm14 = vcmp.eq.s32.totalorder %v907_v14, 0 }
 0x21d   : > { %v2479_v22 = vpop.eup %2478  ;;  %vm912_vm15 = vcmp.eq.s32.totalorder %v907_v14, 2  ;;  %v1724_v63 = vor.u32 4788187, %v1723_v9  ;;  %v1738_v37 = vadd.s32 3, %v1734_v32  ;;  %v1727_v62 = vcvt.s32.f32 %v1720_v44 }
 0x21e   : > { %v2481_v39 = vpop.eup %2480  ;;  %v913_v17 = vxor.u32 2147483648, %v2479_v22  ;;  %v1186_v19 = vadd.s32 536870912, %v1185_v28  ;;  %v1972_v61 = vsub.s32 32, %v1971_v47  ;;  %v1965_v29 = vor.u32 8388608, %v1964_v7 }
 0x21f   : > { %v910_v18 = vxor.u32 2147483648, %v2481_v39  ;;  %v1725_v1 = vand.u32 2147483647, %v1724_v63  ;;  %v1974_v31 = vshll.u32 %v2566_v60, %v1971_v47  ;;  %v1970_v43 = vshrl.u32 %v1969_v30, 5 }
 0x220   : > { %v914_v23 = vsel %vm912_vm15, %v913_v17, %v2481_v39  ;;  %v3647_v53 = vshrl.u32 %v1186_v19, 30  ;;  %v1975_v16 = vshrl.u32 %v2567_v0, %v1972_v61  ;;  %v1978_v55 = vshrl.u32 %v2568_v2, %v1972_v61 }
 0x221   : > { %v911_v45 = vsel %vm909_vm14, %v2479_v22, %v910_v18  ;;  %v1728_v54 = vmul.f32 %v1727_v62, %v1725_v1  ;;  %v1981_v12 = vshrl.u32 %v2569_v4, %v1972_v61  ;;  %v1977_v41 = vshll.u32 %v2567_v0, %v1971_v47  ;;  %v388_v62 = vpop.f32.mrf.mxu1 }
 0x222   : > { %v915_v48 = vsel %vm908_vm13, %v911_v45, %v914_v23  ;;  %v1188_v33 = vshll.u32 %v3647_v53, 30  ;;  %v1976_v34 = vor.u32 %v1975_v16, %v1974_v31  ;;  %v1980_v21 = vshll.u32 %v2568_v2, %v1971_v47 }
 0x223   : > { %v916_v35 = vsel %vm905_vm12, nan, %v915_v48  ;;  %v1729_v8 = vxor.u32 2147483648, %v1728_v54  ;;  %v1979_v38 = vor.u32 %v1978_v55, %v1977_v41  ;;  %v1983_v40 = vshll.u32 %v2569_v4, %v1971_v47 }
 0x224   : > { %2065 = vst [vmem:[%s3014_s4 + $0x20] sm:$0xff] %v916_v35  ;;  %v3661_v24 = vsub.s32 %v1185_v28, %v1188_v33  ;;  %v1984_v5 = vshrl.u32 %v2570_v6, %v1972_v61  ;;  %v1982_v3 = vor.u32 %v1981_v12, %v1980_v21  ;;  %v1986_v27 = vshll.u32 %v2570_v6, %v1971_v47 }
 0x225   : > { %v1730_v57 = vsel %vm1647_vm3, %v1729_v8, %v1728_v54  ;;  %v1987_v14 = vshrl.u32 %v2571_v13, %v1972_v61  ;;  %v3672_v20 = vand.u32 3, %v1738_v37  ;;  %vm1989_vm0 = vcmp.lt.s32.totalorder %v1970_v43, 1 }
 0x226   : > { %v1733_v58 = vsel %vm3632_vm9, %v3446_v11, %v1730_v57  ;;  %v1191_v49 = vsub.s32 0, %v3661_v24  ;;  %v1985_v56 = vor.u32 %v1984_v5, %v1983_v40  ;;  %v3676_v59 = vadd.f32 %v3506_v50, %v348_v26 }
 0x227   : > { %2482 = vcosq.f32 %v1733_v58  ;;  %v1988_v32 = vor.u32 %v1987_v14, %v1986_v27  ;;  %v1973_v44 = vshrl.u32 %v2566_v60, %v1972_v61  ;;  %vm1992_vm1 = vcmp.lt.s32.totalorder %v1970_v43, 4 }
 0x228   : > { %2484 = vsinq.f32 %v1733_v58  ;;  %v2206_v30 = vmin.u32 %v1191_v49, %v3661_v24  ;;  %v1994_v9 = vsel %vm1992_vm1, %v1982_v3, 2102212464  ;;  %v1997_v52 = vsel %vm1989_vm0, %v1976_v34, %v1979_v38 }
 0x229   : > { %v1998_v36 = vsel %vm1992_vm1, %v1985_v56, 920167782  ;;  %v2005_v7 = vshll.u32 %v1965_v29, 8  ;;  %vm1991_vm2 = vcmp.lt.s32.totalorder %v1970_v43, 3  ;;  %v1993_v47 = vsel %vm1989_vm0, %v1973_v44, %v1976_v34 }
 0x22a   : > { %v1193_v28 = vclz %v2206_v30  ;;  %v2001_v22 = vsel %vm1989_vm0, %v1979_v38, %v1982_v3  ;;  %vm1990_vm3 = vcmp.lt.s32.totalorder %v1970_v43, 2  ;;  %v1995_v63 = vsel %vm1991_vm2, %v1979_v38, %v1994_v9 }
 0x22b   : > { %v1999_v39 = vsel %vm1991_vm2, %v1982_v3, %v1998_v36  ;;  %v2002_v17 = vsel %vm1992_vm1, %v1988_v32, 1326507024  ;;  %v1211_v19 = vsub.s32 4, %v3647_v53  ;;  %v1996_v61 = vsel %vm1990_vm3, %v1993_v47, %v1995_v63 }
 0x22c   : > { %v2207_v37 = vadd.s32 4294967294, %v1193_v28  ;;  %v2000_v18 = vsel %vm1990_vm3, %v1997_v52, %v1999_v39  ;;  %v2003_v1 = vsel %vm1991_vm2, %v1985_v56, %v2002_v17  ;;  %v1024_v54 = vand.u32 2139095040, %v3676_v59 }
 0x22d   : > { %v2004_v23 = vsel %vm1990_vm3, %v2001_v22, %v2003_v1  ;;  %v3681_v31 = vmul.u32.u64.low %v2005_v7, %v2000_v18  ;;  %v3682_v16 = vmul.u32.u64.high %v2005_v7, %v2000_v18, %v3681_v31  ;;  %vm1127_vm5 = vcmp.lt.s32.totalorder %v3509_v25, 0 }
 0x22e   : > { %vm2208_vm4 = vcmp.lt.s32.totalorder %v2207_v37, 0  ;;  %v3685_v29 = vmul.u32.u64.low %v2005_v7, %v2004_v23  ;;  %v3686_v45 = vmul.u32.u64.high %v2005_v7, %v2004_v23, %v3685_v29  ;;  %v1181_v55 = vadd.s32 %v3619_v42, %v3626_v51 }
 0x22f   : > { %v1196_v12 = vsel %vm2208_vm4, 0, %v2207_v37  ;;  %v3693_v48 = vadd.f32 %v3506_v50, %v388_v62  ;;  %v1212_v41 = vsel %vm1127_vm5, %v1211_v19, %v3647_v53  ;;  %v1025_v35 = vshrl.u32 %v1024_v54, 23 }
 0x230   : > { %v1197_v33 = vsub.s32 32, %v1196_v12  ;;  %v1201_v43 = vsub.s32 4294967266, %v1196_v12  ;;  %vm1740_vm6 = vcmp.lt.s32.totalorder %v3672_v20, 2  ;;  %vm3701_vm7 = vcmp.le.f32.partialorder %v1125_v10, 0.7853982 }
 0x231   : > { %v2012_v42 = vmul.u32 %v2005_v7, %v1996_v61  ;;  %v2015_v51 = vadd.s32 1, %v3682_v16  ;;  %v1198_v50 = vshll.u32 %v3661_v24, %v1196_v12  ;;  %vm2014_vm8 = vc.u32 %v3686_v45, %v3681_v31 }
 0x232   : > { %v1199_v34 = vshrl.u32 %v1181_v55, %v1197_v33  ;;  %v1202_v21 = vadd.s32 127, %v1201_v43  ;;  %v1214_v53 = vsel %vm3701_vm7, 0, %v1212_v41  ;;  %v2201_v40 = vadd.s32 4294967169, %v1025_v35 }
 0x233   : > { %v2016_v38 = vsel %vm2014_vm8, %v2015_v51, %v3682_v16  ;;  %v1856_v10 = vand.u32 2139095040, %v3693_v48  ;;  %vm1741_vm9 = vcmp.eq.s32.totalorder %v3672_v20, 0  ;;  %vm1744_vm11 = vcmp.eq.s32.totalorder %v3672_v20, 2 }
 0x234   : > { %v2483_v5 = vpop.eup %2482  ;;  %v1200_v26 = vor.u32 %v1199_v34, %v1198_v50  ;;  %v1203_v57 = vshll.u32 %v1202_v21, 23  ;;  %v2017_v3 = vadd.s32 %v2016_v38, %v2012_v42  ;;  %v1021_v14 = vand.u32 2147483647, %v3676_v59 }
 0x235   : > { %v2485_v24 = vpop.eup %2484  ;;  %v1745_v27 = vxor.u32 2147483648, %v2483_v5  ;;  %v1031_v58 = vadd.s32 1, %v2201_v40  ;;  %v1218_v32 = vadd.s32 3, %v1214_v53  ;;  %v1857_v52 = vshrl.u32 %v1856_v10, 23 }
 0x236   : > { %v1742_v49 = vxor.u32 2147483648, %v2485_v24  ;;  %v1204_v56 = vor.u32 4788187, %v1203_v57  ;;  %v2018_v30 = vadd.s32 536870912, %v2017_v3  ;;  %v1207_v9 = vcvt.s32.f32 %v1200_v26 }
 0x237   : > { %v1746_v44 = vsel %vm1744_vm11, %v1745_v27, %v2485_v24  ;;  %vm1032_vm10 = vcmp.gt.s32.totalorder %v1031_v58, 0  ;;  %vm1737_vm12 = vweird.f32 %v3446_v11  ;;  %v3725_v19 = vand.u32 3, %v1218_v32 }
 0x238   : > { %v1743_v36 = vsel %vm1741_vm9, %v2483_v5, %v1742_v49  ;;  %v1205_v7 = vand.u32 2147483647, %v1204_v56  ;;  %v3718_v28 = vshrl.u32 %v2018_v30, 30  ;;  %v1033_v47 = vsel %vm1032_vm10, %v1031_v58, 0 }
 0x239   : > { %v1747_v22 = vsel %vm1740_vm6, %v1743_v36, %v1746_v44  ;;  %v1035_v63 = vand.u32 31, %v1033_v47  ;;  %v1028_v18 = vand.u32 8388607, %v1021_v14  ;;  %v1034_v23 = vshrl.u32 %v1033_v47, 5 }
 0x23a   : > { %v1748_v39 = vsel %vm1737_vm12, nan, %v1747_v22  ;;  %v1208_v17 = vmul.f32 %v1207_v9, %v1205_v7  ;;  %v2020_v37 = vshll.u32 %v3718_v28, 30  ;;  %v2233_v11 = vadd.s32 4294967169, %v1857_v52 }
 0x23b   : > { %2073 = vst [vmem:[%s3014_s4 + $0x60] sm:$0xff] %v1748_v39  ;;  %v1036_v1 = vsub.s32 32, %v1035_v63  ;;  %v1038_v20 = vshll.u32 %v2566_v60, %v1035_v63  ;;  %v1041_v29 = vshll.u32 %v2567_v0, %v1035_v63  ;;  %v1044_v33 = vshll.u32 %v2568_v2, %v1035_v63 }
 0x23c   : > { %v1209_v62 = vxor.u32 2147483648, %v1208_v17  ;;  %v3729_v61 = vsub.s32 %v2017_v3, %v2020_v37  ;;  %v1047_v42 = vshll.u32 %v2569_v4, %v1035_v63  ;;  %v1050_v38 = vshll.u32 %v2570_v6, %v1035_v63 }
 0x23d   : > { %v1039_v16 = vshrl.u32 %v2567_v0, %v1036_v1  ;;  %v1042_v54 = vshrl.u32 %v2568_v2, %v1036_v1  ;;  %v1045_v43 = vshrl.u32 %v2569_v4, %v1036_v1  ;;  %v1048_v51 = vshrl.u32 %v2570_v6, %v1036_v1 }
 0x23e   : > { %v1210_v55 = vsel %vm1127_vm5, %v1209_v62, %v1208_v17  ;;  %v2023_v12 = vsub.s32 0, %v3729_v61  ;;  %v1051_v40 = vshrl.u32 %v2571_v13, %v1036_v1  ;;  %v2013_v8 = vadd.s32 %v3681_v31, %v3686_v45 }
 0x23f   : > { %v1213_v41 = vsel %vm3701_vm7, %v3509_v25, %v1210_v55  ;;  %v1040_v35 = vor.u32 %v1039_v16, %v1038_v20  ;;  %v1043_v34 = vor.u32 %v1042_v54, %v1041_v29  ;;  %v1046_v21 = vor.u32 %v1045_v43, %v1044_v33 }
 0x240   : > { %2486 = vcosq.f32 %v1213_v41  ;;  %v2238_v50 = vmin.u32 %v2023_v12, %v3729_v61  ;;  %v1049_v53 = vor.u32 %v1048_v51, %v1047_v42  ;;  %v1029_v5 = vor.u32 8388608, %v1028_v18 }
 0x241   : > { %2488 = vsinq.f32 %v1213_v41  ;;  %v1853_v26 = vand.u32 2147483647, %v3693_v48  ;;  %v1037_v57 = vshrl.u32 %v2566_v60, %v1036_v1  ;;  %v1052_v3 = vor.u32 %v1051_v40, %v1050_v38 }
 0x242   : > { %v2025_v10 = vclz %v2238_v50  ;;  %vm1053_vm13 = vcmp.lt.s32.totalorder %v1034_v23, 1  ;;  %v1863_v24 = vadd.s32 1, %v2233_v11  ;;  %vm1055_vm14 = vcmp.lt.s32.totalorder %v1034_v23, 3 }
 0x243   : > { %vm1056_vm15 = vcmp.lt.s32.totalorder %v1034_v23, 4  ;;  %v1061_v58 = vsel %vm1053_vm13, %v1040_v35, %v1043_v34  ;;  %v1065_v32 = vsel %vm1053_vm13, %v1043_v34, %v1046_v21  ;;  %vm1959_vm0 = vcmp.lt.s32.totalorder %v3566_v15, 0 }
 0x244   : > { %v2239_v27 = vadd.s32 4294967294, %v2025_v10  ;;  %v1058_v49 = vsel %vm1056_vm15, %v1046_v21, 2102212464  ;;  %v1062_v56 = vsel %vm1056_vm15, %v1049_v53, 920167782  ;;  %vm1054_vm2 = vcmp.lt.s32.totalorder %v1034_v23, 2 }
 0x245   : > { %v1066_v30 = vsel %vm1056_vm15, %v1052_v3, 1326507024  ;;  %v1063_v31 = vsel %vm1055_vm14, %v1046_v21, %v1062_v56  ;;  %v1069_v36 = vshll.u32 %v1029_v5, 8  ;;  %v1057_v22 = vsel %vm1053_vm13, %v1037_v57, %v1040_v35 }
 0x246   : > { %vm2240_vm1 = vcmp.lt.s32.totalorder %v2239_v27, 0  ;;  %v1067_v45 = vsel %vm1055_vm14, %v1049_v53, %v1066_v30  ;;  %v1064_v9 = vsel %vm1054_vm2, %v1061_v58, %v1063_v31  ;;  %v1059_v63 = vsel %vm1055_vm14, %v1043_v34, %v1058_v49 }
 0x247   : > { %v2028_v44 = vsel %vm2240_vm1, 0, %v2239_v27  ;;  %v1068_v52 = vsel %vm1054_vm2, %v1065_v32, %v1067_v45  ;;  %v3764_v37 = vmul.u32.u64.low %v1069_v36, %v1064_v9  ;;  %v3765_v18 = vmul.u32.u64.high %v1069_v36, %v1064_v9, %v3764_v37 }
 0x248   : > { %v2029_v7 = vsub.s32 32, %v2028_v44  ;;  %v2033_v47 = vsub.s32 4294967266, %v2028_v44  ;;  %v3761_v39 = vmul.u32.u64.low %v1069_v36, %v1068_v52  ;;  %v3762_v17 = vmul.u32.u64.high %v1069_v36, %v1068_v52, %v3761_v39 }
 0x249   : > { %vm1217_vm3 = vweird.f32 %v3509_v25  ;;  %v2030_v1 = vshll.u32 %v3729_v61, %v2028_v44  ;;  %vm1864_vm4 = vcmp.gt.s32.totalorder %v1863_v24, 0  ;;  %v2043_v20 = vsub.s32 4, %v3718_v28 }
 0x24a   : > { %v2031_v62 = vshrl.u32 %v2013_v8, %v2029_v7  ;;  %v2034_v11 = vadd.s32 127, %v2033_v47  ;;  %v1060_v16 = vsel %vm1054_vm2, %v1057_v22, %v1059_v63  ;;  %v1860_v29 = vand.u32 8388607, %v1853_v26 }
 0x24b   : > { %v1865_v54 = vsel %vm1864_vm4, %v1863_v24, 0  ;;  %vm1220_vm5 = vcmp.lt.s32.totalorder %v3725_v19, 2  ;;  %vm1221_vm6 = vcmp.eq.s32.totalorder %v3725_v19, 0  ;;  %vm1224_vm7 = vcmp.eq.s32.totalorder %v3725_v19, 2 }
 0x24c   : > { %v2032_v55 = vor.u32 %v2031_v62, %v2030_v1  ;;  %v2035_v12 = vshll.u32 %v2034_v11, 23  ;;  %v1867_v33 = vand.u32 31, %v1865_v54  ;;  %vm1078_vm8 = vc.u32 %v3762_v17, %v3764_v37 }
 0x24d   : > { %v2487_v43 = vpop.eup %2486  ;;  %v1079_v61 = vadd.s32 1, %v3765_v18  ;;  %vm3782_vm9 = vcmp.le.f32.partialorder %v1957_v46, 0.7853982  ;;  %v1076_v51 = vmul.u32 %v1069_v36, %v1060_v16  ;;  %v2044_v21 = vsel %vm1959_vm0, %v2043_v20, %v3718_v28 }
 0x24e   : > { %v2489_v23 = vpop.eup %2488  ;;  %v1225_v41 = vxor.u32 2147483648, %v2487_v43  ;;  %v2036_v42 = vor.u32 4788187, %v2035_v12  ;;  %v1868_v50 = vsub.s32 32, %v1867_v33  ;;  %v1861_v38 = vor.u32 8388608, %v1860_v29 }
 0x24f   : > { %v1222_v34 = vxor.u32 2147483648, %v2489_v23  ;;  %v1080_v53 = vsel %vm1078_vm8, %v1079_v61, %v3765_v18  ;;  %v2039_v10 = vcvt.s32.f32 %v2032_v55  ;;  %v1866_v57 = vshrl.u32 %v1865_v54, 5 }
 0x250   : > { %v1226_v40 = vsel %vm1224_vm7, %v1225_v41, %v2489_v23  ;;  %v2037_v8 = vand.u32 2147483647, %v2036_v42  ;;  %v1081_v5 = vadd.s32 %v1080_v53, %v1076_v51  ;;  %v1871_v3 = vshrl.u32 %v2567_v0, %v1868_v50 }
 0x251   : > { %v1223_v46 = vsel %vm1221_vm6, %v2487_v43, %v1222_v34  ;;  %v1874_v24 = vshrl.u32 %v2568_v2, %v1868_v50  ;;  %v1877_v49 = vshrl.u32 %v2569_v4, %v1868_v50  ;;  %v1870_v32 = vshll.u32 %v2566_v60, %v1867_v33 }
 0x252   : > { %v1227_v27 = vsel %vm1220_vm5, %v1223_v46, %v1226_v40  ;;  %v2040_v28 = vmul.f32 %v2039_v10, %v2037_v8  ;;  %v1082_v58 = vadd.s32 536870912, %v1081_v5  ;;  %v1873_v30 = vshll.u32 %v2567_v0, %v1867_v33 }
 0x253   : > { %v1228_v56 = vsel %vm1217_vm3, nan, %v1227_v27  ;;  %v1876_v31 = vshll.u32 %v2568_v2, %v1867_v33  ;;  %v1879_v19 = vshll.u32 %v2569_v4, %v1867_v33  ;;  %v1880_v9 = vshrl.u32 %v2570_v6, %v1868_v50 }
 0x254   : > { %2068 = vst [vmem:[%s3014_s4 + $0x38] sm:$0xff] %v1228_v56  ;;  %v2041_v45 = vxor.u32 2147483648, %v2040_v28  ;;  %v3803_v44 = vshrl.u32 %v1082_v58, 30  ;;  %v1872_v52 = vor.u32 %v1871_v3, %v1870_v32  ;;  %v1875_v36 = vor.u32 %v1874_v24, %v1873_v30 }
 0x255   : > { %v1882_v7 = vshll.u32 %v2570_v6, %v1867_v33  ;;  %v1883_v25 = vshrl.u32 %v2571_v13, %v1868_v50  ;;  %v1878_v2 = vor.u32 %v1877_v49, %v1876_v31  ;;  %v1881_v22 = vor.u32 %v1880_v9, %v1879_v19 }
 0x256   : > { %v2042_v47 = vsel %vm1959_vm0, %v2041_v45, %v2040_v28  ;;  %v1084_v0 = vshll.u32 %v3803_v44, 30  ;;  %v2046_v4 = vsel %vm3782_vm9, 0, %v2044_v21  ;;  %vm1885_vm11 = vcmp.lt.s32.totalorder %v1866_v57, 1 }
 0x257   : > { %v2045_v63 = vsel %vm3782_vm9, %v3566_v15, %v2042_v47  ;;  %v1884_v39 = vor.u32 %v1883_v25, %v1882_v7  ;;  %v1901_v6 = vshll.u32 %v1861_v38, 8  ;;  %v1869_v13 = vshrl.u32 %v2566_v60, %v1868_v50 }
 0x258   : > { %2490 = vcosq.f32 %v2045_v63  ;;  %v1085_v18 = vsub.s32 %v1081_v5, %v1084_v0  ;;  %vm1888_vm10 = vcmp.lt.s32.totalorder %v1866_v57, 4  ;;  %v1893_v1 = vsel %vm1885_vm11, %v1872_v52, %v1875_v36 }
 0x259   : > { %2492 = vsinq.f32 %v2045_v63  ;;  %vm1887_vm12 = vcmp.lt.s32.totalorder %v1866_v57, 3  ;;  %v1890_v11 = vsel %vm1888_vm10, %v1878_v2, 2102212464  ;;  %v1894_v20 = vsel %vm1888_vm10, %v1881_v22, 920167782 }
 0x25a   : > { %v1087_v62 = vsub.s32 0, %v1085_v18  ;;  %vm1886_vm13 = vcmp.lt.s32.totalorder %v1866_v57, 2  ;;  %v1895_v16 = vsel %vm1887_vm12, %v1878_v2, %v1894_v20  ;;  %v1897_v29 = vsel %vm1885_vm11, %v1875_v36, %v1878_v2 }
 0x25b   : > { %v1898_v54 = vsel %vm1888_vm10, %v1884_v39, 1326507024  ;;  %v1889_v12 = vsel %vm1885_vm11, %v1869_v13, %v1872_v52  ;;  %v1896_v33 = vsel %vm1886_vm13, %v1893_v1, %v1895_v16  ;;  %v1891_v61 = vsel %vm1887_vm12, %v1875_v36, %v1890_v11 }
 0x25c   : > { %v2202_v55 = vmin.u32 %v1087_v62, %v1085_v18  ;;  %v1899_v43 = vsel %vm1887_vm12, %v1881_v22, %v1898_v54  ;;  %v3820_v41 = vmul.u32.u64.low %v1901_v6, %v1896_v33  ;;  %v3821_v60 = vmul.u32.u64.high %v1901_v6, %v1896_v33, %v3820_v41 }
 0x25d   : > { %v1900_v23 = vsel %vm1886_vm13, %v1897_v29, %v1899_v43  ;;  %v2050_v42 = vadd.s32 3, %v2046_v4  ;;  %v1892_v21 = vsel %vm1886_vm13, %v1889_v12, %v1891_v61  ;;  %v1077_v10 = vadd.s32 %v3764_v37, %v3762_v17 }
 0x25e   : > { %v1089_v35 = vclz %v2202_v55  ;;  %v3823_v51 = vmul.u32.u64.low %v1901_v6, %v1900_v23  ;;  %v3824_v50 = vmul.u32.u64.high %v1901_v6, %v1900_v23, %v3823_v51  ;;  %v1911_v53 = vadd.s32 1, %v3821_v60 }
 0x25f   : > { %v2051_v38 = vand.u32 3, %v2050_v42  ;;  %v1908_v8 = vmul.u32 %v1901_v6, %v1892_v21  ;;  %vm2049_vm3 = vweird.f32 %v3566_v15  ;;  %vm1023_vm4 = vcmp.lt.s32.totalorder %v3676_v59, 0 }
 0x260   : > { %v2203_v34 = vadd.s32 4294967294, %v1089_v35  ;;  %vm1910_vm15 = vc.u32 %v3824_v50, %v3820_v41  ;;  %v1107_v4 = vsub.s32 4, %v3803_v44  ;;  %vm1022_vm5 = vcmp.le.f32.partialorder %v1021_v14, 0.7853982 }
 0x261   : > { %v1912_v3 = vsel %vm1910_vm15, %v1911_v53, %v3821_v60  ;;  %vm2056_vm0 = vcmp.eq.s32.totalorder %v2051_v38, 2  ;;  %vm2053_vm1 = vcmp.eq.s32.totalorder %v2051_v38, 0  ;;  %vm2052_vm2 = vcmp.lt.s32.totalorder %v2051_v38, 2 }
 0x262   : > { %vm2204_vm14 = vcmp.lt.s32.totalorder %v2203_v34, 0  ;;  %v1913_v27 = vadd.s32 %v1912_v3, %v1908_v8  ;;  %v1108_v13 = vsel %vm1023_vm4, %v1107_v4, %v3803_v44  ;;  %v1909_v20 = vadd.s32 %v3820_v41, %v3824_v50 }
 0x263   : > { %v1092_v40 = vsel %vm2204_vm14, 0, %v2203_v34  ;;  %v1110_v62 = vsel %vm1022_vm5, 0, %v1108_v13  ;;  %vm1113_vm11 = vweird.f32 %v3676_v59  ;;  %vm1855_vm10 = vcmp.lt.s32.totalorder %v3693_v48, 0 }
 0x264   : > { %v1093_v5 = vsub.s32 32, %v1092_v40  ;;  %v1097_v46 = vsub.s32 4294967266, %v1092_v40  ;;  %v1094_v58 = vshll.u32 %v1085_v18, %v1092_v40  ;;  %v1914_v30 = vadd.s32 536870912, %v1913_v27 }
 0x265   : > { %v2491_v24 = vpop.eup %2490  ;;  %v1114_v54 = vadd.s32 3, %v1110_v62  ;;  %vm1854_vm12 = vcmp.le.f32.partialorder %v1853_v26, 0.7853982 }
 0x266   : > { %v2493_v28 = vpop.eup %2492  ;;  %v2057_v57 = vxor.u32 2147483648, %v2491_v24  ;;  %v1095_v49 = vshrl.u32 %v1077_v10, %v1093_v5  ;;  %v1098_v56 = vadd.s32 127, %v1097_v46  ;;  %v1915_v37 = vshrl.u32 %v1914_v30, 30 }
 0x267   : > { %v2054_v32 = vxor.u32 2147483648, %v2493_v28  ;;  %v1115_v61 = vand.u32 3, %v1114_v54 }
 0x268   : > { %v2058_v31 = vsel %vm2056_vm0, %v2057_v57, %v2493_v28  ;;  %v1096_v45 = vor.u32 %v1095_v49, %v1094_v58  ;;  %v1099_v19 = vshll.u32 %v1098_v56, 23  ;;  %v1916_v7 = vshll.u32 %v1915_v37, 30 }
 0x269   : > { %v2055_v17 = vsel %vm2053_vm1, %v2491_v24, %v2054_v32  ;;  %vm1120_vm7 = vcmp.eq.s32.totalorder %v1115_v61, 2  ;;  %vm1117_vm8 = vcmp.eq.s32.totalorder %v1115_v61, 0  ;;  %vm1116_vm9 = vcmp.lt.s32.totalorder %v1115_v61, 2 }
 0x26a   : > { %v2059_v9 = vsel %vm2052_vm2, %v2055_v17, %v2058_v31  ;;  %v1100_v52 = vor.u32 4788187, %v1099_v19  ;;  %v1103_v47 = vcvt.s32.f32 %v1096_v45  ;;  %v1917_v0 = vsub.s32 %v1913_v27, %v1916_v7 }
 0x26b   : > { %v2060_v36 = vsel %vm2049_vm3, nan, %v2059_v9  ;;  %v1939_v40 = vsub.s32 4, %v1915_v37  ;;  %vm1945_vm0 = vweird.f32 %v3693_v48 }
 0x26c   : > { %2076 = vst [vmem:[%s3014_s4 + $0x78] sm:$0xff] %v2060_v36  ;;  %v1101_v25 = vand.u32 2147483647, %v1100_v52  ;;  %v1919_v22 = vsub.s32 0, %v1917_v0 }
 0x26d   : > { %v1940_v46 = vsel %vm1855_vm10, %v1939_v40, %v1915_v37 }
 0x26e   : > { %v1104_v2 = vmul.f32 %v1103_v47, %v1101_v25  ;;  %v2234_v39 = vmin.u32 %v1919_v22, %v1917_v0  ;;  %v1942_v3 = vsel %vm1854_vm12, 0, %v1940_v46 }
 0x26f   : > { %v1946_v24 = vadd.s32 3, %v1942_v3 }
 0x270   : > { %v1105_v63 = vxor.u32 2147483648, %v1104_v2  ;;  %v1921_v6 = vclz %v2234_v39 }
 0x272   : > { %v1106_v15 = vsel %vm1023_vm4, %v1105_v63, %v1104_v2  ;;  %v2235_v1 = vadd.s32 4294967294, %v1921_v6 }
 0x273   : > { %v1109_v18 = vsel %vm1022_vm5, %v3676_v59, %v1106_v15  ;;  %v1947_v59 = vand.u32 3, %v1946_v24 }
 0x274   : > { %2494 = vcosq.f32 %v1109_v18  ;;  %vm2236_vm6 = vcmp.lt.s32.totalorder %v2235_v1, 0 }
 0x275   : > { %2496 = vsinq.f32 %v1109_v18  ;;  %v1924_v11 = vsel %vm2236_vm6, 0, %v2235_v1  ;;  %vm1952_vm13 = vcmp.eq.s32.totalorder %v1947_v59, 2  ;;  %vm1949_vm14 = vcmp.eq.s32.totalorder %v1947_v59, 0 }
 0x276   : > { %v1925_v16 = vsub.s32 32, %v1924_v11  ;;  %v1929_v29 = vsub.s32 4294967266, %v1924_v11  ;;  %v1926_v55 = vshll.u32 %v1917_v0, %v1924_v11  ;;  %vm1948_vm15 = vcmp.lt.s32.totalorder %v1947_v59, 2 }
 0x278   : > { %v1927_v12 = vshrl.u32 %v1909_v20, %v1925_v16  ;;  %v1930_v14 = vadd.s32 127, %v1929_v29 }
 0x27a   : > { %v1928_v33 = vor.u32 %v1927_v12, %v1926_v55  ;;  %v1931_v43 = vshll.u32 %v1930_v14, 23 }
 0x27c   : > { %v1932_v23 = vor.u32 4788187, %v1931_v43  ;;  %v1935_v44 = vcvt.s32.f32 %v1928_v33 }
 0x27e   : > { %v1933_v35 = vand.u32 2147483647, %v1932_v23 }
 0x280   : > { %v1936_v21 = vmul.f32 %v1935_v44, %v1933_v35 }
 0x281   : > { %v2495_v60 = vpop.eup %2494 }
 0x282   : > { %v2497_v42 = vpop.eup %2496  ;;  %v1121_v51 = vxor.u32 2147483648, %v2495_v60  ;;  %v1937_v53 = vxor.u32 2147483648, %v1936_v21 }
 0x283   : > { %v1118_v34 = vxor.u32 2147483648, %v2497_v42 }
 0x284   : > { %v1122_v41 = vsel %vm1120_vm7, %v1121_v51, %v2497_v42  ;;  %v1938_v10 = vsel %vm1855_vm10, %v1937_v53, %v1936_v21 }
 0x285   : > { %v1119_v50 = vsel %vm1117_vm8, %v2495_v60, %v1118_v34  ;;  %v1941_v5 = vsel %vm1854_vm12, %v3693_v48, %v1938_v10 }
 0x286   : > { %v1123_v38 = vsel %vm1116_vm9, %v1119_v50, %v1122_v41  ;;  %2498 = vcosq.f32 %v1941_v5 }
 0x287   : > { %v1124_v8 = vsel %vm1113_vm11, nan, %v1123_v38  ;;  %2500 = vsinq.f32 %v1941_v5 }
 0x288   : > { %2067 = vst [vmem:[%s3014_s4 + $0x30] sm:$0xff] %v1124_v8 }
 0x293   : > { %v2499_v27 = vpop.eup %2498 }
 0x294   : > { %v2501_v28 = vpop.eup %2500  ;;  %v1953_v57 = vxor.u32 2147483648, %v2499_v27 }
 0x295   : > { %v1950_v58 = vxor.u32 2147483648, %v2501_v28 }
 0x296   : > { %v1954_v26 = vsel %vm1952_vm13, %v1953_v57, %v2501_v28 }
 0x297   : > { %v1951_v49 = vsel %vm1949_vm14, %v2499_v27, %v1950_v58 }
 0x298   : > { %v1955_v56 = vsel %vm1948_vm15, %v1951_v49, %v1954_v26 }
 0x299   : > { %v1956_v32 = vsel %vm1945_vm0, nan, %v1955_v56 }
 0x29a   : > { %2075 = vst [vmem:[%s3014_s4 + $0x70] sm:$0xff] %v1956_v32 }
 0x29b   : > { %2517 = shalt.err (!%p2514_p3)
}
 0x29c   : > { %s2518_s27 = scalar_lea.hbm %s3852_s19, 2048  ;;  %s2522_s30 = scalar_lea.hbm %s3903_s3, 4096 }
 0x29d   : > { %p2519_p4 = scmp.ne.s32.totalorder %s3852_s19, %s2518_s27  ;;  %p2523_p9 = scmp.lt.s32.totalorder %s3852_s19, %s3903_s3 }
 0x29e   : > { %p2524_p10 = scmp.lt.s32.totalorder %s2522_s30, %s2518_s27 }
 0x29f   : > { %p2520_p7 = pnand %p2519_p4, %p2633_p5 }
 0x2a0   : > { %p2525_p11 = por %p2524_p10, %p2523_p9 }
 0x2a1   : > { %p2521_p8 = pneg %p2520_p7 }
 0x2a3   : > { %p2526_p12 = pnand %p2525_p11, %p2521_p8 }
 0x2a5   : > { %2529 = shalt.err (!%p2526_p12)
}
 0x2a6   : > { %s2573_s6 = smov 128   ;;  %s2574_s7 = smov 8  }
 0x2a7   : > { %2391 = dma.vmem_to_hbm [thread:$0]  (%p2633_p5), %s3854_s10, 2048, %s3852_s19, %s3860_s16, %s2573_s6, %s2573_s6, %s2574_s7  }
 0x2a8 PF: > { %p2397_p13 = scmp.ge.s32.totalorder %s2564_s15, 2  ;;  %s2106_s8 = sand.u32 1, %s2552_s12  }
 0x2a9   : > { %s2107_s9 = scalar_lea.sflag [#allocation3], %s2106_s8 }
 0x2aa   : > { %p2394_p0 = pnand %p2397_p13, %p2637_p6 }
 0x2ac   : > { %p2395_p1 = pneg %p2394_p0 }
 0x2ae   : > { %2547 = dma.done.wait (%p2395_p1), %s2107_s9, 2048  }
 0x2af   : > { %2549 = vsyncadd (%p2395_p1), %s2107_s9, 4294965248  ;;  %p13_p2 = scmp.ge.s32.totalorder %s2620_s18, 4   ;;  %s3934_s12 = smov %s2556_s13 }
 0x2b0   : > { %s3935_s13 = smov %s2560_s14  ;;  %s3936_s14 = smov %s2631_s21 }
 0x2b1   : > { %s3937_s15 = smov %s2620_s18  ;;  %15 = sbr.rel (!%p13_p2) target bundleno = 3 (0x3), region = 67 }
 0x2b6   :  { %2112 = vsyncpa [#allocation3], 1 }
 0x2b7   :  { %2114 = vsyncpa [#allocation3 + $0x1], 1 }

</bundles_post_ra>
